<compile_context>
chip_gen: v6e
topology: v6e:2x2x1
jax: 0.10.0
libtpu: 0.0.40
codegen_flags: <defaults>
</compile_context>

<pallas_src>
import functools

import jax
import jax.numpy as jnp
from jax.experimental import pallas as pl
from jax.experimental.pallas import tpu as pltpu


def _gru_predictor_kernel(z_flat_ref,   # [L*Bp, C] bf16 (seq-major, batch padded)
                          w_ih_t_ref,   # [C, 3H]   bf16 (= weight_ih^T)
                          w_h_ref,      # [H, 3H]   bf16 (= weight_hh^T = Whr^T|Whz^T|Whn^T)
                          b_fused_ref,  # [1, 3H]   f32  ([b_ir+b_hr, b_iz+b_hz, b_in])
                          b_hn_ref,     # [1, H]    f32
                          w_out_t_ref,  # [H, O]    f32  (= out_proj.weight^T)
                          b_out_ref,    # [1, O]    f32
                          out_ref,      # [P*Bp, O] f32
                          *, L, Bp, H, pred_len):
    b_fused = b_fused_ref[...]                    # [1, 3H]  f32
    b_hn = b_hn_ref[...]                          # [1, H]   f32
    w_h = w_h_ref[...]                            # [H, 3H]  bf16

    # ---- all encode input gates in ONE bf16 matmul (off the serial chain) --
    i_g_all = jnp.dot(z_flat_ref[...], w_ih_t_ref[...],
                      preferred_element_type=jnp.float32) + b_fused   # [L*Bp, 3H] f32

    def step(ig, h):
        # ig: [*, 3H] f32 input-gate preactivations (input + fused r/z biases)
        # h : [Bp, H] f32 hidden state
        hg = jnp.dot(h.astype(jnp.bfloat16), w_h,
                     preferred_element_type=jnp.float32)              # [Bp, 3H] f32
        # sigmoid(x) = 0.5*(tanh(0.5*x)+1): single EUP op, r and z together.
        rz = 0.5 + 0.5 * jnp.tanh(0.5 * (ig[:, :2 * H] + hg[:, :2 * H]))
        r = rz[:, :H]
        z = rz[:, H:]
        n = jnp.tanh(ig[:, 2 * H:] + r * (hg[:, 2 * H:] + b_hn))
        return n + z * (h - n)

    h = jnp.zeros((Bp, H), dtype=jnp.float32)

    # ---- encode: fully unrolled; per-step gate slices are 8-sublane aligned -
    for t in range(L):
        h = step(i_g_all[t * Bp:(t + 1) * Bp, :], h)

    # ---- decode: zero inputs -> constant fused-bias input gates; keep every
    # ---- hidden state in vregs (no scratch, no masked partial stores) -------
    hs = []
    for _ in range(pred_len):
        h = step(b_fused, h)
        hs.append(h)

    h_all = jnp.concatenate(hs, axis=0)                               # [P*Bp, H] f32

    # ---- single bulk output projection + one bulk store ---------------------
    out_ref[...] = (jnp.dot(h_all, w_out_t_ref[...],
                            preferred_element_type=jnp.float32) + b_out_ref[...])


def prepare_params(params, *, hidden_dim):
    """One-time (parameter-load-time) preprocessing: transposes, per-gate bias
    fusion, bf16 casts for MXU operands. Keep the result and reuse per call."""
    H = hidden_dim
    f32, bf16 = jnp.float32, jnp.bfloat16
    w_ih = params["w_ih"].astype(f32)              # [3H, C]
    w_hh = params["w_hh"].astype(f32)              # [3H, H]
    b_ih = params["b_ih"].astype(f32)              # [3H]
    b_hh = params["b_hh"].astype(f32)              # [3H]
    return {
        "w_ih_t": w_ih.T.astype(bf16),             # [C, 3H]
        "w_h": w_hh.T.astype(bf16),                # [H, 3H] = Whr^T | Whz^T | Whn^T
        "b_fused": jnp.concatenate([
            b_ih[0:H] + b_hh[0:H],                 # r
            b_ih[H:2 * H] + b_hh[H:2 * H],         # z
            b_ih[2 * H:3 * H],                     # n (b_hn applied inside r*(...))
        ]).reshape(1, 3 * H),
        "b_hn": b_hh[2 * H:3 * H].reshape(1, H),
        "w_out_t": params["w_out"].astype(f32).T,  # [H, O]
        "b_out": params["b_out"].astype(f32).reshape(1, -1),
    }


def gru_predictor_forward(z_seq, prep, *, hidden_dim, pred_len):
    """z_seq: [B, L, C] float32 -> [B, pred_len, output_dim] float32."""
    B, L, C = z_seq.shape
    H = hidden_dim
    O = prep["w_out_t"].shape[1]
    Bp = max(8, ((B + 7) // 8) * 8)                # pad batch to sublane multiple

    # Glue (fused under jit): seq-major layout, batch pad, bf16 cast.
    z_pad = jnp.zeros((L, Bp, C), jnp.float32).at[:, :B, :].set(
        jnp.transpose(z_seq.astype(jnp.float32), (1, 0, 2)))
    z_flat = z_pad.reshape(L * Bp, C).astype(jnp.bfloat16)

    kernel = functools.partial(_gru_predictor_kernel,
                               L=L, Bp=Bp, H=H, pred_len=pred_len)

    out_flat = pl.pallas_call(
        kernel,
        out_shape=jax.ShapeDtypeStruct((pred_len * Bp, O), jnp.float32),
        # No grid: tiny problem, every operand is a full-array VMEM block.
        in_specs=[pl.BlockSpec(memory_space=pltpu.MemorySpace.VMEM)] * 7,
        out_specs=pl.BlockSpec(memory_space=pltpu.MemorySpace.VMEM),
    )(z_flat, prep["w_ih_t"], prep["w_h"], prep["b_fused"], prep["b_hn"],
      prep["w_out_t"], prep["b_out"])

    out = out_flat.reshape(pred_len, Bp, O)[:, :B, :]     # drop batch padding
    return jnp.transpose(out, (1, 0, 2))                  # [B, P, O]


def init_params(key, input_dim, hidden_dim, output_dim):
    """Deterministic init mimicking PyTorch's U(-1/sqrt(H), 1/sqrt(H))."""
    ks = jax.random.split(key, 6)
    s = 1.0 / jnp.sqrt(jnp.float32(hidden_dim))
    u = lambda k, shape: jax.random.uniform(k, shape, jnp.float32, -s, s)
    return {
        "w_ih": u(ks[0], (3 * hidden_dim, input_dim)),
        "w_hh": u(ks[1], (3 * hidden_dim, hidden_dim)),
        "b_ih": u(ks[2], (3 * hidden_dim,)),
        "b_hh": u(ks[3], (3 * hidden_dim,)),
        "w_out": u(ks[4], (output_dim, hidden_dim)),
        "b_out": u(ks[5], (output_dim,)),
    }


def _reference_forward_f32(z_seq, params, *, hidden_dim, pred_len):
    """Pure-f32 JAX reference of the PyTorch forward (exact semantics)."""
    B, L, C = z_seq.shape
    H = hidden_dim
    w_ih, w_hh = params["w_ih"], params["w_hh"]
    b_ih, b_hh = params["b_ih"], params["b_hh"]

    def cell(x, h):
        ig = x @ w_ih.T + b_ih
        hg = h @ w_hh.T + b_hh
        r = jax.nn.sigmoid(ig[:, :H] + hg[:, :H])
        z = jax.nn.sigmoid(ig[:, H:2 * H] + hg[:, H:2 * H])
        n = jnp.tanh(ig[:, 2 * H:] + r * hg[:, 2 * H:])
        return (1 - z) * n + z * h

    h = jnp.zeros((B, H), jnp.float32)
    for t in range(L):
        h = cell(z_seq[:, t, :], h)
    outs = []
    x0 = jnp.zeros((B, C), jnp.float32)
    for _ in range(pred_len):
        h = cell(x0, h)
        outs.append(h @ params["w_out"].T + params["b_out"])
    return jnp.stack(outs, axis=1)


def _reference_forward_mixed(z_seq, params, *, hidden_dim, pred_len):
    """Reference mirroring the kernel's precision choices (bf16 matmul
    operands, f32 accumulation and elementwise) for a tight correctness check."""
    B, L, C = z_seq.shape
    H = hidden_dim
    bf = jnp.bfloat16
    w_ih_t = params["w_ih"].T.astype(bf)
    w_hh_t = params["w_hh"].T.astype(bf)
    b_ih, b_hh = params["b_ih"], params["b_hh"]
    b_fused = jnp.concatenate([b_ih[:H] + b_hh[:H],
                               b_ih[H:2 * H] + b_hh[H:2 * H],
                               b_ih[2 * H:]])
    b_hn = b_hh[2 * H:]

    def cell(ig, h):
        hg = jnp.dot(h.astype(bf), w_hh_t, preferred_element_type=jnp.float32)
        r = jax.nn.sigmoid(ig[:, :H] + hg[:, :H])
        z = jax.nn.sigmoid(ig[:, H:2 * H] + hg[:, H:2 * H])
        n = jnp.tanh(ig[:, 2 * H:] + r * (hg[:, 2 * H:] + b_hn))
        return n + z * (h - n)

    h = jnp.zeros((B, H), jnp.float32)
    ig_enc = jnp.dot(z_seq.astype(bf), w_ih_t,
                     preferred_element_type=jnp.float32) + b_fused   # [B, L, 3H]
    for t in range(L):
        h = cell(ig_enc[:, t, :], h)
    ig_dec = jnp.broadcast_to(b_fused, (B, 3 * H))
    outs = []
    for _ in range(pred_len):
        h = cell(ig_dec, h)
        outs.append(h @ params["w_out"].T + params["b_out"])
    return jnp.stack(outs, axis=1)


if __name__ == "__main__":
    # Small shapes: B=2, L=8, input_dim=4, hidden_dim=32, output_dim=4, pred_len=10
    B, L, C, H, O, P = 2, 8, 4, 32, 4, 10

    key = jax.random.PRNGKey(0)
    k_x, k_p = jax.random.split(key)
    z_seq = jax.random.normal(k_x, (B, L, C), dtype=jnp.float32)
    params = init_params(k_p, C, H, O)

    prep = prepare_params(params, hidden_dim=H)          # once, at load time
    fwd = jax.jit(functools.partial(gru_predictor_forward,
                                    hidden_dim=H, pred_len=P))

    out = jax.block_until_ready(fwd(z_seq, prep))
    assert out.shape == (B, P, O), out.shape

    # Tight check vs a reference with identical (bf16-operand) matmul precision.
    ref_mixed = _reference_forward_mixed(z_seq, params, hidden_dim=H, pred_len=P)
    assert jnp.allclose(out, ref_mixed, atol=5e-3, rtol=5e-3), "mismatch vs mixed-precision reference"

    # Semantic sanity check vs the exact f32 PyTorch-equivalent reference
    # (looser tolerance accounts for bf16 MXU operands).
    ref_f32 = _reference_forward_f32(z_seq, params, hidden_dim=H, pred_len=P)
    assert jnp.allclose(out, ref_f32, atol=1e-1, rtol=1e-1), "mismatch vs f32 reference"

    print("KERNEL_OK")
</pallas_src>

<mosaic_0001>
module attributes {stable_mosaic.version = 11 : i64} {
  func.func @_gru_predictor_kernel(%arg0: memref<64x4xbf16, #tpu.memory_space<vmem>>, %arg1: memref<4x96xbf16, #tpu.memory_space<vmem>>, %arg2: memref<32x96xbf16, #tpu.memory_space<vmem>>, %arg3: memref<1x96xf32, #tpu.memory_space<vmem>>, %arg4: memref<1x32xf32, #tpu.memory_space<vmem>>, %arg5: memref<32x4xf32, #tpu.memory_space<vmem>>, %arg6: memref<1x4xf32, #tpu.memory_space<vmem>>, %arg7: memref<80x4xf32, #tpu.memory_space<vmem>>) attributes {dimension_semantics = [], scalar_prefetch = 0 : i64, scratch_operands = 0 : i64, tpu.core_type = #tpu.core_type<tc>} {
    %c0 = arith.constant 0 : index
    %c0_0 = arith.constant 0 : index
    %0 = vector.load %arg3[%c0, %c0_0] : memref<1x96xf32, #tpu.memory_space<vmem>>, vector<1x96xf32>
    %c0_1 = arith.constant 0 : index
    %c0_2 = arith.constant 0 : index
    %1 = vector.load %arg4[%c0_1, %c0_2] : memref<1x32xf32, #tpu.memory_space<vmem>>, vector<1x32xf32>
    %c0_3 = arith.constant 0 : index
    %c0_4 = arith.constant 0 : index
    %2 = vector.load %arg2[%c0_3, %c0_4] : memref<32x96xbf16, #tpu.memory_space<vmem>>, vector<32x96xbf16>
    %c0_5 = arith.constant 0 : index
    %c0_6 = arith.constant 0 : index
    %3 = vector.load %arg0[%c0_5, %c0_6] : memref<64x4xbf16, #tpu.memory_space<vmem>>, vector<64x4xbf16>
    %c0_7 = arith.constant 0 : index
    %c0_8 = arith.constant 0 : index
    %4 = vector.load %arg1[%c0_7, %c0_8] : memref<4x96xbf16, #tpu.memory_space<vmem>>, vector<4x96xbf16>
    %cst = arith.constant dense<0.000000e+00> : vector<64x96xf32>
    %5 = tpu.matmul %3, %4, %cst {dimension_numbers = #tpu.dot_dimension_numbers<[1], [0], [0], [1], [0, 0, 1, 1], [], []>} : vector<64x4xbf16>, vector<4x96xbf16>, vector<64x96xf32> -> vector<64x96xf32>
    %6 = vector.broadcast %0 : vector<1x96xf32> to vector<64x96xf32>
    %7 = arith.addf %5, %6 : vector<64x96xf32>
    %cst_9 = arith.constant 0.000000e+00 : f32
    %8 = vector.broadcast %cst_9 : f32 to vector<8x32xf32>
    %9 = vector.extract_strided_slice %7 {offsets = [0, 0], sizes = [8, 96], strides = [1, 1]} : vector<64x96xf32> to vector<8x96xf32>
    %10 = arith.truncf %8 : vector<8x32xf32> to vector<8x32xbf16>
    %cst_10 = arith.constant dense<0.000000e+00> : vector<8x96xf32>
    %11 = tpu.matmul %10, %2, %cst_10 {dimension_numbers = #tpu.dot_dimension_numbers<[1], [0], [0], [1], [0, 0, 1, 1], [], []>} : vector<8x32xbf16>, vector<32x96xbf16>, vector<8x96xf32> -> vector<8x96xf32>
    %12 = vector.extract_strided_slice %9 {offsets = [0, 0], sizes = [8, 64], strides = [1, 1]} : vector<8x96xf32> to vector<8x64xf32>
    %13 = vector.extract_strided_slice %11 {offsets = [0, 0], sizes = [8, 64], strides = [1, 1]} : vector<8x96xf32> to vector<8x64xf32>
    %14 = arith.addf %12, %13 : vector<8x64xf32>
    %cst_11 = arith.constant 5.000000e-01 : f32
    %15 = vector.broadcast %cst_11 : f32 to vector<8x64xf32>
    %16 = arith.mulf %15, %14 : vector<8x64xf32>
    %17 = math.tanh %16 : vector<8x64xf32>
    %cst_12 = arith.constant 5.000000e-01 : f32
    %18 = vector.broadcast %cst_12 : f32 to vector<8x64xf32>
    %19 = arith.mulf %18, %17 : vector<8x64xf32>
    %cst_13 = arith.constant 5.000000e-01 : f32
    %20 = vector.broadcast %cst_13 : f32 to vector<8x64xf32>
    %21 = arith.addf %20, %19 : vector<8x64xf32>
    %22 = vector.extract_strided_slice %21 {offsets = [0, 0], sizes = [8, 32], strides = [1, 1]} : vector<8x64xf32> to vector<8x32xf32>
    %23 = vector.extract_strided_slice %21 {offsets = [0, 32], sizes = [8, 32], strides = [1, 1]} : vector<8x64xf32> to vector<8x32xf32>
    %24 = vector.extract_strided_slice %9 {offsets = [0, 64], sizes = [8, 32], strides = [1, 1]} : vector<8x96xf32> to vector<8x32xf32>
    %25 = vector.extract_strided_slice %11 {offsets = [0, 64], sizes = [8, 32], strides = [1, 1]} : vector<8x96xf32> to vector<8x32xf32>
    %26 = vector.broadcast %1 : vector<1x32xf32> to vector<8x32xf32>
    %27 = arith.addf %25, %26 : vector<8x32xf32>
    %28 = arith.mulf %22, %27 : vector<8x32xf32>
    %29 = arith.addf %24, %28 : vector<8x32xf32>
    %30 = math.tanh %29 : vector<8x32xf32>
    %31 = arith.subf %8, %30 : vector<8x32xf32>
    %32 = arith.mulf %23, %31 : vector<8x32xf32>
    %33 = arith.addf %30, %32 : vector<8x32xf32>
    %34 = vector.extract_strided_slice %7 {offsets = [8, 0], sizes = [8, 96], strides = [1, 1]} : vector<64x96xf32> to vector<8x96xf32>
    %35 = arith.truncf %33 : vector<8x32xf32> to vector<8x32xbf16>
    %cst_14 = arith.constant dense<0.000000e+00> : vector<8x96xf32>
    %36 = tpu.matmul %35, %2, %cst_14 {dimension_numbers = #tpu.dot_dimension_numbers<[1], [0], [0], [1], [0, 0, 1, 1], [], []>} : vector<8x32xbf16>, vector<32x96xbf16>, vector<8x96xf32> -> vector<8x96xf32>
    %37 = vector.extract_strided_slice %34 {offsets = [0, 0], sizes = [8, 64], strides = [1, 1]} : vector<8x96xf32> to vector<8x64xf32>
    %38 = vector.extract_strided_slice %36 {offsets = [0, 0], sizes = [8, 64], strides = [1, 1]} : vector<8x96xf32> to vector<8x64xf32>
    %39 = arith.addf %37, %38 : vector<8x64xf32>
    %cst_15 = arith.constant 5.000000e-01 : f32
    %40 = vector.broadcast %cst_15 : f32 to vector<8x64xf32>
    %41 = arith.mulf %40, %39 : vector<8x64xf32>
    %42 = math.tanh %41 : vector<8x64xf32>
    %cst_16 = arith.constant 5.000000e-01 : f32
    %43 = vector.broadcast %cst_16 : f32 to vector<8x64xf32>
    %44 = arith.mulf %43, %42 : vector<8x64xf32>
    %cst_17 = arith.constant 5.000000e-01 : f32
    %45 = vector.broadcast %cst_17 : f32 to vector<8x64xf32>
    %46 = arith.addf %45, %44 : vector<8x64xf32>
    %47 = vector.extract_strided_slice %46 {offsets = [0, 0], sizes = [8, 32], strides = [1, 1]} : vector<8x64xf32> to vector<8x32xf32>
    %48 = vector.extract_strided_slice %46 {offsets = [0, 32], sizes = [8, 32], strides = [1, 1]} : vector<8x64xf32> to vector<8x32xf32>
    %49 = vector.extract_strided_slice %34 {offsets = [0, 64], sizes = [8, 32], strides = [1, 1]} : vector<8x96xf32> to vector<8x32xf32>
    %50 = vector.extract_strided_slice %36 {offsets = [0, 64], sizes = [8, 32], strides = [1, 1]} : vector<8x96xf32> to vector<8x32xf32>
    %51 = vector.broadcast %1 : vector<1x32xf32> to vector<8x32xf32>
    %52 = arith.addf %50, %51 : vector<8x32xf32>
    %53 = arith.mulf %47, %52 : vector<8x32xf32>
    %54 = arith.addf %49, %53 : vector<8x32xf32>
    %55 = math.tanh %54 : vector<8x32xf32>
    %56 = arith.subf %33, %55 : vector<8x32xf32>
    %57 = arith.mulf %48, %56 : vector<8x32xf32>
    %58 = arith.addf %55, %57 : vector<8x32xf32>
    %59 = vector.extract_strided_slice %7 {offsets = [16, 0], sizes = [8, 96], strides = [1, 1]} : vector<64x96xf32> to vector<8x96xf32>
    %60 = arith.truncf %58 : vector<8x32xf32> to vector<8x32xbf16>
    %cst_18 = arith.constant dense<0.000000e+00> : vector<8x96xf32>
    %61 = tpu.matmul %60, %2, %cst_18 {dimension_numbers = #tpu.dot_dimension_numbers<[1], [0], [0], [1], [0, 0, 1, 1], [], []>} : vector<8x32xbf16>, vector<32x96xbf16>, vector<8x96xf32> -> vector<8x96xf32>
    %62 = vector.extract_strided_slice %59 {offsets = [0, 0], sizes = [8, 64], strides = [1, 1]} : vector<8x96xf32> to vector<8x64xf32>
    %63 = vector.extract_strided_slice %61 {offsets = [0, 0], sizes = [8, 64], strides = [1, 1]} : vector<8x96xf32> to vector<8x64xf32>
    %64 = arith.addf %62, %63 : vector<8x64xf32>
    %cst_19 = arith.constant 5.000000e-01 : f32
    %65 = vector.broadcast %cst_19 : f32 to vector<8x64xf32>
    %66 = arith.mulf %65, %64 : vector<8x64xf32>
    %67 = math.tanh %66 : vector<8x64xf32>
    %cst_20 = arith.constant 5.000000e-01 : f32
    %68 = vector.broadcast %cst_20 : f32 to vector<8x64xf32>
    %69 = arith.mulf %68, %67 : vector<8x64xf32>
    %cst_21 = arith.constant 5.000000e-01 : f32
    %70 = vector.broadcast %cst_21 : f32 to vector<8x64xf32>
    %71 = arith.addf %70, %69 : vector<8x64xf32>
    %72 = vector.extract_strided_slice %71 {offsets = [0, 0], sizes = [8, 32], strides = [1, 1]} : vector<8x64xf32> to vector<8x32xf32>
    %73 = vector.extract_strided_slice %71 {offsets = [0, 32], sizes = [8, 32], strides = [1, 1]} : vector<8x64xf32> to vector<8x32xf32>
    %74 = vector.extract_strided_slice %59 {offsets = [0, 64], sizes = [8, 32], strides = [1, 1]} : vector<8x96xf32> to vector<8x32xf32>
    %75 = vector.extract_strided_slice %61 {offsets = [0, 64], sizes = [8, 32], strides = [1, 1]} : vector<8x96xf32> to vector<8x32xf32>
    %76 = vector.broadcast %1 : vector<1x32xf32> to vector<8x32xf32>
    %77 = arith.addf %75, %76 : vector<8x32xf32>
    %78 = arith.mulf %72, %77 : vector<8x32xf32>
    %79 = arith.addf %74, %78 : vector<8x32xf32>
    %80 = math.tanh %79 : vector<8x32xf32>
    %81 = arith.subf %58, %80 : vector<8x32xf32>
    %82 = arith.mulf %73, %81 : vector<8x32xf32>
    %83 = arith.addf %80, %82 : vector<8x32xf32>
    %84 = vector.extract_strided_slice %7 {offsets = [24, 0], sizes = [8, 96], strides = [1, 1]} : vector<64x96xf32> to vector<8x96xf32>
    %85 = arith.truncf %83 : vector<8x32xf32> to vector<8x32xbf16>
    %cst_22 = arith.constant dense<0.000000e+00> : vector<8x96xf32>
    %86 = tpu.matmul %85, %2, %cst_22 {dimension_numbers = #tpu.dot_dimension_numbers<[1], [0], [0], [1], [0, 0, 1, 1], [], []>} : vector<8x32xbf16>, vector<32x96xbf16>, vector<8x96xf32> -> vector<8x96xf32>
    %87 = vector.extract_strided_slice %84 {offsets = [0, 0], sizes = [8, 64], strides = [1, 1]} : vector<8x96xf32> to vector<8x64xf32>
    %88 = vector.extract_strided_slice %86 {offsets = [0, 0], sizes = [8, 64], strides = [1, 1]} : vector<8x96xf32> to vector<8x64xf32>
    %89 = arith.addf %87, %88 : vector<8x64xf32>
    %cst_23 = arith.constant 5.000000e-01 : f32
    %90 = vector.broadcast %cst_23 : f32 to vector<8x64xf32>
    %91 = arith.mulf %90, %89 : vector<8x64xf32>
    %92 = math.tanh %91 : vector<8x64xf32>
    %cst_24 = arith.constant 5.000000e-01 : f32
    %93 = vector.broadcast %cst_24 : f32 to vector<8x64xf32>
    %94 = arith.mulf %93, %92 : vector<8x64xf32>
    %cst_25 = arith.constant 5.000000e-01 : f32
    %95 = vector.broadcast %cst_25 : f32 to vector<8x64xf32>
    %96 = arith.addf %95, %94 : vector<8x64xf32>
    %97 = vector.extract_strided_slice %96 {offsets = [0, 0], sizes = [8, 32], strides = [1, 1]} : vector<8x64xf32> to vector<8x32xf32>
    %98 = vector.extract_strided_slice %96 {offsets = [0, 32], sizes = [8, 32], strides = [1, 1]} : vector<8x64xf32> to vector<8x32xf32>
    %99 = vector.extract_strided_slice %84 {offsets = [0, 64], sizes = [8, 32], strides = [1, 1]} : vector<8x96xf32> to vector<8x32xf32>
    %100 = vector.extract_strided_slice %86 {offsets = [0, 64], sizes = [8, 32], strides = [1, 1]} : vector<8x96xf32> to vector<8x32xf32>
    %101 = vector.broadcast %1 : vector<1x32xf32> to vector<8x32xf32>
    %102 = arith.addf %100, %101 : vector<8x32xf32>
    %103 = arith.mulf %97, %102 : vector<8x32xf32>
    %104 = arith.addf %99, %103 : vector<8x32xf32>
    %105 = math.tanh %104 : vector<8x32xf32>
    %106 = arith.subf %83, %105 : vector<8x32xf32>
    %107 = arith.mulf %98, %106 : vector<8x32xf32>
    %108 = arith.addf %105, %107 : vector<8x32xf32>
    %109 = vector.extract_strided_slice %7 {offsets = [32, 0], sizes = [8, 96], strides = [1, 1]} : vector<64x96xf32> to vector<8x96xf32>
    %110 = arith.truncf %108 : vector<8x32xf32> to vector<8x32xbf16>
    %cst_26 = arith.constant dense<0.000000e+00> : vector<8x96xf32>
    %111 = tpu.matmul %110, %2, %cst_26 {dimension_numbers = #tpu.dot_dimension_numbers<[1], [0], [0], [1], [0, 0, 1, 1], [], []>} : vector<8x32xbf16>, vector<32x96xbf16>, vector<8x96xf32> -> vector<8x96xf32>
    %112 = vector.extract_strided_slice %109 {offsets = [0, 0], sizes = [8, 64], strides = [1, 1]} : vector<8x96xf32> to vector<8x64xf32>
    %113 = vector.extract_strided_slice %111 {offsets = [0, 0], sizes = [8, 64], strides = [1, 1]} : vector<8x96xf32> to vector<8x64xf32>
    %114 = arith.addf %112, %113 : vector<8x64xf32>
    %cst_27 = arith.constant 5.000000e-01 : f32
    %115 = vector.broadcast %cst_27 : f32 to vector<8x64xf32>
    %116 = arith.mulf %115, %114 : vector<8x64xf32>
    %117 = math.tanh %116 : vector<8x64xf32>
    %cst_28 = arith.constant 5.000000e-01 : f32
    %118 = vector.broadcast %cst_28 : f32 to vector<8x64xf32>
    %119 = arith.mulf %118, %117 : vector<8x64xf32>
    %cst_29 = arith.constant 5.000000e-01 : f32
    %120 = vector.broadcast %cst_29 : f32 to vector<8x64xf32>
    %121 = arith.addf %120, %119 : vector<8x64xf32>
    %122 = vector.extract_strided_slice %121 {offsets = [0, 0], sizes = [8, 32], strides = [1, 1]} : vector<8x64xf32> to vector<8x32xf32>
    %123 = vector.extract_strided_slice %121 {offsets = [0, 32], sizes = [8, 32], strides = [1, 1]} : vector<8x64xf32> to vector<8x32xf32>
    %124 = vector.extract_strided_slice %109 {offsets = [0, 64], sizes = [8, 32], strides = [1, 1]} : vector<8x96xf32> to vector<8x32xf32>
    %125 = vector.extract_strided_slice %111 {offsets = [0, 64], sizes = [8, 32], strides = [1, 1]} : vector<8x96xf32> to vector<8x32xf32>
    %126 = vector.broadcast %1 : vector<1x32xf32> to vector<8x32xf32>
    %127 = arith.addf %125, %126 : vector<8x32xf32>
    %128 = arith.mulf %122, %127 : vector<8x32xf32>
    %129 = arith.addf %124, %128 : vector<8x32xf32>
    %130 = math.tanh %129 : vector<8x32xf32>
    %131 = arith.subf %108, %130 : vector<8x32xf32>
    %132 = arith.mulf %123, %131 : vector<8x32xf32>
    %133 = arith.addf %130, %132 : vector<8x32xf32>
    %134 = vector.extract_strided_slice %7 {offsets = [40, 0], sizes = [8, 96], strides = [1, 1]} : vector<64x96xf32> to vector<8x96xf32>
    %135 = arith.truncf %133 : vector<8x32xf32> to vector<8x32xbf16>
    %cst_30 = arith.constant dense<0.000000e+00> : vector<8x96xf32>
    %136 = tpu.matmul %135, %2, %cst_30 {dimension_numbers = #tpu.dot_dimension_numbers<[1], [0], [0], [1], [0, 0, 1, 1], [], []>} : vector<8x32xbf16>, vector<32x96xbf16>, vector<8x96xf32> -> vector<8x96xf32>
    %137 = vector.extract_strided_slice %134 {offsets = [0, 0], sizes = [8, 64], strides = [1, 1]} : vector<8x96xf32> to vector<8x64xf32>
    %138 = vector.extract_strided_slice %136 {offsets = [0, 0], sizes = [8, 64], strides = [1, 1]} : vector<8x96xf32> to vector<8x64xf32>
    %139 = arith.addf %137, %138 : vector<8x64xf32>
    %cst_31 = arith.constant 5.000000e-01 : f32
    %140 = vector.broadcast %cst_31 : f32 to vector<8x64xf32>
    %141 = arith.mulf %140, %139 : vector<8x64xf32>
    %142 = math.tanh %141 : vector<8x64xf32>
    %cst_32 = arith.constant 5.000000e-01 : f32
    %143 = vector.broadcast %cst_32 : f32 to vector<8x64xf32>
    %144 = arith.mulf %143, %142 : vector<8x64xf32>
    %cst_33 = arith.constant 5.000000e-01 : f32
    %145 = vector.broadcast %cst_33 : f32 to vector<8x64xf32>
    %146 = arith.addf %145, %144 : vector<8x64xf32>
    %147 = vector.extract_strided_slice %146 {offsets = [0, 0], sizes = [8, 32], strides = [1, 1]} : vector<8x64xf32> to vector<8x32xf32>
    %148 = vector.extract_strided_slice %146 {offsets = [0, 32], sizes = [8, 32], strides = [1, 1]} : vector<8x64xf32> to vector<8x32xf32>
    %149 = vector.extract_strided_slice %134 {offsets = [0, 64], sizes = [8, 32], strides = [1, 1]} : vector<8x96xf32> to vector<8x32xf32>
    %150 = vector.extract_strided_slice %136 {offsets = [0, 64], sizes = [8, 32], strides = [1, 1]} : vector<8x96xf32> to vector<8x32xf32>
    %151 = vector.broadcast %1 : vector<1x32xf32> to vector<8x32xf32>
    %152 = arith.addf %150, %151 : vector<8x32xf32>
    %153 = arith.mulf %147, %152 : vector<8x32xf32>
    %154 = arith.addf %149, %153 : vector<8x32xf32>
    %155 = math.tanh %154 : vector<8x32xf32>
    %156 = arith.subf %133, %155 : vector<8x32xf32>
    %157 = arith.mulf %148, %156 : vector<8x32xf32>
    %158 = arith.addf %155, %157 : vector<8x32xf32>
    %159 = vector.extract_strided_slice %7 {offsets = [48, 0], sizes = [8, 96], strides = [1, 1]} : vector<64x96xf32> to vector<8x96xf32>
    %160 = arith.truncf %158 : vector<8x32xf32> to vector<8x32xbf16>
    %cst_34 = arith.constant dense<0.000000e+00> : vector<8x96xf32>
    %161 = tpu.matmul %160, %2, %cst_34 {dimension_numbers = #tpu.dot_dimension_numbers<[1], [0], [0], [1], [0, 0, 1, 1], [], []>} : vector<8x32xbf16>, vector<32x96xbf16>, vector<8x96xf32> -> vector<8x96xf32>
    %162 = vector.extract_strided_slice %159 {offsets = [0, 0], sizes = [8, 64], strides = [1, 1]} : vector<8x96xf32> to vector<8x64xf32>
    %163 = vector.extract_strided_slice %161 {offsets = [0, 0], sizes = [8, 64], strides = [1, 1]} : vector<8x96xf32> to vector<8x64xf32>
    %164 = arith.addf %162, %163 : vector<8x64xf32>
    %cst_35 = arith.constant 5.000000e-01 : f32
    %165 = vector.broadcast %cst_35 : f32 to vector<8x64xf32>
    %166 = arith.mulf %165, %164 : vector<8x64xf32>
    %167 = math.tanh %166 : vector<8x64xf32>
    %cst_36 = arith.constant 5.000000e-01 : f32
    %168 = vector.broadcast %cst_36 : f32 to vector<8x64xf32>
    %169 = arith.mulf %168, %167 : vector<8x64xf32>
    %cst_37 = arith.constant 5.000000e-01 : f32
    %170 = vector.broadcast %cst_37 : f32 to vector<8x64xf32>
    %171 = arith.addf %170, %169 : vector<8x64xf32>
    %172 = vector.extract_strided_slice %171 {offsets = [0, 0], sizes = [8, 32], strides = [1, 1]} : vector<8x64xf32> to vector<8x32xf32>
    %173 = vector.extract_strided_slice %171 {offsets = [0, 32], sizes = [8, 32], strides = [1, 1]} : vector<8x64xf32> to vector<8x32xf32>
    %174 = vector.extract_strided_slice %159 {offsets = [0, 64], sizes = [8, 32], strides = [1, 1]} : vector<8x96xf32> to vector<8x32xf32>
    %175 = vector.extract_strided_slice %161 {offsets = [0, 64], sizes = [8, 32], strides = [1, 1]} : vector<8x96xf32> to vector<8x32xf32>
    %176 = vector.broadcast %1 : vector<1x32xf32> to vector<8x32xf32>
    %177 = arith.addf %175, %176 : vector<8x32xf32>
    %178 = arith.mulf %172, %177 : vector<8x32xf32>
    %179 = arith.addf %174, %178 : vector<8x32xf32>
    %180 = math.tanh %179 : vector<8x32xf32>
    %181 = arith.subf %158, %180 : vector<8x32xf32>
    %182 = arith.mulf %173, %181 : vector<8x32xf32>
    %183 = arith.addf %180, %182 : vector<8x32xf32>
    %184 = vector.extract_strided_slice %7 {offsets = [56, 0], sizes = [8, 96], strides = [1, 1]} : vector<64x96xf32> to vector<8x96xf32>
    %185 = arith.truncf %183 : vector<8x32xf32> to vector<8x32xbf16>
    %cst_38 = arith.constant dense<0.000000e+00> : vector<8x96xf32>
    %186 = tpu.matmul %185, %2, %cst_38 {dimension_numbers = #tpu.dot_dimension_numbers<[1], [0], [0], [1], [0, 0, 1, 1], [], []>} : vector<8x32xbf16>, vector<32x96xbf16>, vector<8x96xf32> -> vector<8x96xf32>
    %187 = vector.extract_strided_slice %184 {offsets = [0, 0], sizes = [8, 64], strides = [1, 1]} : vector<8x96xf32> to vector<8x64xf32>
    %188 = vector.extract_strided_slice %186 {offsets = [0, 0], sizes = [8, 64], strides = [1, 1]} : vector<8x96xf32> to vector<8x64xf32>
    %189 = arith.addf %187, %188 : vector<8x64xf32>
    %cst_39 = arith.constant 5.000000e-01 : f32
    %190 = vector.broadcast %cst_39 : f32 to vector<8x64xf32>
    %191 = arith.mulf %190, %189 : vector<8x64xf32>
    %192 = math.tanh %191 : vector<8x64xf32>
    %cst_40 = arith.constant 5.000000e-01 : f32
    %193 = vector.broadcast %cst_40 : f32 to vector<8x64xf32>
    %194 = arith.mulf %193, %192 : vector<8x64xf32>
    %cst_41 = arith.constant 5.000000e-01 : f32
    %195 = vector.broadcast %cst_41 : f32 to vector<8x64xf32>
    %196 = arith.addf %195, %194 : vector<8x64xf32>
    %197 = vector.extract_strided_slice %196 {offsets = [0, 0], sizes = [8, 32], strides = [1, 1]} : vector<8x64xf32> to vector<8x32xf32>
    %198 = vector.extract_strided_slice %196 {offsets = [0, 32], sizes = [8, 32], strides = [1, 1]} : vector<8x64xf32> to vector<8x32xf32>
    %199 = vector.extract_strided_slice %184 {offsets = [0, 64], sizes = [8, 32], strides = [1, 1]} : vector<8x96xf32> to vector<8x32xf32>
    %200 = vector.extract_strided_slice %186 {offsets = [0, 64], sizes = [8, 32], strides = [1, 1]} : vector<8x96xf32> to vector<8x32xf32>
    %201 = vector.broadcast %1 : vector<1x32xf32> to vector<8x32xf32>
    %202 = arith.addf %200, %201 : vector<8x32xf32>
    %203 = arith.mulf %197, %202 : vector<8x32xf32>
    %204 = arith.addf %199, %203 : vector<8x32xf32>
    %205 = math.tanh %204 : vector<8x32xf32>
    %206 = arith.subf %183, %205 : vector<8x32xf32>
    %207 = arith.mulf %198, %206 : vector<8x32xf32>
    %208 = arith.addf %205, %207 : vector<8x32xf32>
    %209 = arith.truncf %208 : vector<8x32xf32> to vector<8x32xbf16>
    %cst_42 = arith.constant dense<0.000000e+00> : vector<8x96xf32>
    %210 = tpu.matmul %209, %2, %cst_42 {dimension_numbers = #tpu.dot_dimension_numbers<[1], [0], [0], [1], [0, 0, 1, 1], [], []>} : vector<8x32xbf16>, vector<32x96xbf16>, vector<8x96xf32> -> vector<8x96xf32>
    %211 = vector.extract_strided_slice %0 {offsets = [0, 0], sizes = [1, 64], strides = [1, 1]} : vector<1x96xf32> to vector<1x64xf32>
    %212 = vector.extract_strided_slice %210 {offsets = [0, 0], sizes = [8, 64], strides = [1, 1]} : vector<8x96xf32> to vector<8x64xf32>
    %213 = vector.broadcast %211 : vector<1x64xf32> to vector<8x64xf32>
    %214 = arith.addf %213, %212 : vector<8x64xf32>
    %cst_43 = arith.constant 5.000000e-01 : f32
    %215 = vector.broadcast %cst_43 : f32 to vector<8x64xf32>
    %216 = arith.mulf %215, %214 : vector<8x64xf32>
    %217 = math.tanh %216 : vector<8x64xf32>
    %cst_44 = arith.constant 5.000000e-01 : f32
    %218 = vector.broadcast %cst_44 : f32 to vector<8x64xf32>
    %219 = arith.mulf %218, %217 : vector<8x64xf32>
    %cst_45 = arith.constant 5.000000e-01 : f32
    %220 = vector.broadcast %cst_45 : f32 to vector<8x64xf32>
    %221 = arith.addf %220, %219 : vector<8x64xf32>
    %222 = vector.extract_strided_slice %221 {offsets = [0, 0], sizes = [8, 32], strides = [1, 1]} : vector<8x64xf32> to vector<8x32xf32>
    %223 = vector.extract_strided_slice %221 {offsets = [0, 32], sizes = [8, 32], strides = [1, 1]} : vector<8x64xf32> to vector<8x32xf32>
    %224 = vector.extract_strided_slice %0 {offsets = [0, 64], sizes = [1, 32], strides = [1, 1]} : vector<1x96xf32> to vector<1x32xf32>
    %225 = vector.extract_strided_slice %210 {offsets = [0, 64], sizes = [8, 32], strides = [1, 1]} : vector<8x96xf32> to vector<8x32xf32>
    %226 = vector.broadcast %1 : vector<1x32xf32> to vector<8x32xf32>
    %227 = arith.addf %225, %226 : vector<8x32xf32>
    %228 = arith.mulf %222, %227 : vector<8x32xf32>
    %229 = vector.broadcast %224 : vector<1x32xf32> to vector<8x32xf32>
    %230 = arith.addf %229, %228 : vector<8x32xf32>
    %231 = math.tanh %230 : vector<8x32xf32>
    %232 = arith.subf %208, %231 : vector<8x32xf32>
    %233 = arith.mulf %223, %232 : vector<8x32xf32>
    %234 = arith.addf %231, %233 : vector<8x32xf32>
    %235 = arith.truncf %234 : vector<8x32xf32> to vector<8x32xbf16>
    %cst_46 = arith.constant dense<0.000000e+00> : vector<8x96xf32>
    %236 = tpu.matmul %235, %2, %cst_46 {dimension_numbers = #tpu.dot_dimension_numbers<[1], [0], [0], [1], [0, 0, 1, 1], [], []>} : vector<8x32xbf16>, vector<32x96xbf16>, vector<8x96xf32> -> vector<8x96xf32>
    %237 = vector.extract_strided_slice %0 {offsets = [0, 0], sizes = [1, 64], strides = [1, 1]} : vector<1x96xf32> to vector<1x64xf32>
    %238 = vector.extract_strided_slice %236 {offsets = [0, 0], sizes = [8, 64], strides = [1, 1]} : vector<8x96xf32> to vector<8x64xf32>
    %239 = vector.broadcast %237 : vector<1x64xf32> to vector<8x64xf32>
    %240 = arith.addf %239, %238 : vector<8x64xf32>
    %cst_47 = arith.constant 5.000000e-01 : f32
    %241 = vector.broadcast %cst_47 : f32 to vector<8x64xf32>
    %242 = arith.mulf %241, %240 : vector<8x64xf32>
    %243 = math.tanh %242 : vector<8x64xf32>
    %cst_48 = arith.constant 5.000000e-01 : f32
    %244 = vector.broadcast %cst_48 : f32 to vector<8x64xf32>
    %245 = arith.mulf %244, %243 : vector<8x64xf32>
    %cst_49 = arith.constant 5.000000e-01 : f32
    %246 = vector.broadcast %cst_49 : f32 to vector<8x64xf32>
    %247 = arith.addf %246, %245 : vector<8x64xf32>
    %248 = vector.extract_strided_slice %247 {offsets = [0, 0], sizes = [8, 32], strides = [1, 1]} : vector<8x64xf32> to vector<8x32xf32>
    %249 = vector.extract_strided_slice %247 {offsets = [0, 32], sizes = [8, 32], strides = [1, 1]} : vector<8x64xf32> to vector<8x32xf32>
    %250 = vector.extract_strided_slice %0 {offsets = [0, 64], sizes = [1, 32], strides = [1, 1]} : vector<1x96xf32> to vector<1x32xf32>
    %251 = vector.extract_strided_slice %236 {offsets = [0, 64], sizes = [8, 32], strides = [1, 1]} : vector<8x96xf32> to vector<8x32xf32>
    %252 = vector.broadcast %1 : vector<1x32xf32> to vector<8x32xf32>
    %253 = arith.addf %251, %252 : vector<8x32xf32>
    %254 = arith.mulf %248, %253 : vector<8x32xf32>
    %255 = vector.broadcast %250 : vector<1x32xf32> to vector<8x32xf32>
    %256 = arith.addf %255, %254 : vector<8x32xf32>
    %257 = math.tanh %256 : vector<8x32xf32>
    %258 = arith.subf %234, %257 : vector<8x32xf32>
    %259 = arith.mulf %249, %258 : vector<8x32xf32>
    %260 = arith.addf %257, %259 : vector<8x32xf32>
    %261 = arith.truncf %260 : vector<8x32xf32> to vector<8x32xbf16>
    %cst_50 = arith.constant dense<0.000000e+00> : vector<8x96xf32>
    %262 = tpu.matmul %261, %2, %cst_50 {dimension_numbers = #tpu.dot_dimension_numbers<[1], [0], [0], [1], [0, 0, 1, 1], [], []>} : vector<8x32xbf16>, vector<32x96xbf16>, vector<8x96xf32> -> vector<8x96xf32>
    %263 = vector.extract_strided_slice %0 {offsets = [0, 0], sizes = [1, 64], strides = [1, 1]} : vector<1x96xf32> to vector<1x64xf32>
    %264 = vector.extract_strided_slice %262 {offsets = [0, 0], sizes = [8, 64], strides = [1, 1]} : vector<8x96xf32> to vector<8x64xf32>
    %265 = vector.broadcast %263 : vector<1x64xf32> to vector<8x64xf32>
    %266 = arith.addf %265, %264 : vector<8x64xf32>
    %cst_51 = arith.constant 5.000000e-01 : f32
    %267 = vector.broadcast %cst_51 : f32 to vector<8x64xf32>
    %268 = arith.mulf %267, %266 : vector<8x64xf32>
    %269 = math.tanh %268 : vector<8x64xf32>
    %cst_52 = arith.constant 5.000000e-01 : f32
    %270 = vector.broadcast %cst_52 : f32 to vector<8x64xf32>
    %271 = arith.mulf %270, %269 : vector<8x64xf32>
    %cst_53 = arith.constant 5.000000e-01 : f32
    %272 = vector.broadcast %cst_53 : f32 to vector<8x64xf32>
    %273 = arith.addf %272, %271 : vector<8x64xf32>
    %274 = vector.extract_strided_slice %273 {offsets = [0, 0], sizes = [8, 32], strides = [1, 1]} : vector<8x64xf32> to vector<8x32xf32>
    %275 = vector.extract_strided_slice %273 {offsets = [0, 32], sizes = [8, 32], strides = [1, 1]} : vector<8x64xf32> to vector<8x32xf32>
    %276 = vector.extract_strided_slice %0 {offsets = [0, 64], sizes = [1, 32], strides = [1, 1]} : vector<1x96xf32> to vector<1x32xf32>
    %277 = vector.extract_strided_slice %262 {offsets = [0, 64], sizes = [8, 32], strides = [1, 1]} : vector<8x96xf32> to vector<8x32xf32>
    %278 = vector.broadcast %1 : vector<1x32xf32> to vector<8x32xf32>
    %279 = arith.addf %277, %278 : vector<8x32xf32>
    %280 = arith.mulf %274, %279 : vector<8x32xf32>
    %281 = vector.broadcast %276 : vector<1x32xf32> to vector<8x32xf32>
    %282 = arith.addf %281, %280 : vector<8x32xf32>
    %283 = math.tanh %282 : vector<8x32xf32>
    %284 = arith.subf %260, %283 : vector<8x32xf32>
    %285 = arith.mulf %275, %284 : vector<8x32xf32>
    %286 = arith.addf %283, %285 : vector<8x32xf32>
    %287 = arith.truncf %286 : vector<8x32xf32> to vector<8x32xbf16>
    %cst_54 = arith.constant dense<0.000000e+00> : vector<8x96xf32>
    %288 = tpu.matmul %287, %2, %cst_54 {dimension_numbers = #tpu.dot_dimension_numbers<[1], [0], [0], [1], [0, 0, 1, 1], [], []>} : vector<8x32xbf16>, vector<32x96xbf16>, vector<8x96xf32> -> vector<8x96xf32>
    %289 = vector.extract_strided_slice %0 {offsets = [0, 0], sizes = [1, 64], strides = [1, 1]} : vector<1x96xf32> to vector<1x64xf32>
    %290 = vector.extract_strided_slice %288 {offsets = [0, 0], sizes = [8, 64], strides = [1, 1]} : vector<8x96xf32> to vector<8x64xf32>
    %291 = vector.broadcast %289 : vector<1x64xf32> to vector<8x64xf32>
    %292 = arith.addf %291, %290 : vector<8x64xf32>
    %cst_55 = arith.constant 5.000000e-01 : f32
    %293 = vector.broadcast %cst_55 : f32 to vector<8x64xf32>
    %294 = arith.mulf %293, %292 : vector<8x64xf32>
    %295 = math.tanh %294 : vector<8x64xf32>
    %cst_56 = arith.constant 5.000000e-01 : f32
    %296 = vector.broadcast %cst_56 : f32 to vector<8x64xf32>
    %297 = arith.mulf %296, %295 : vector<8x64xf32>
    %cst_57 = arith.constant 5.000000e-01 : f32
    %298 = vector.broadcast %cst_57 : f32 to vector<8x64xf32>
    %299 = arith.addf %298, %297 : vector<8x64xf32>
    %300 = vector.extract_strided_slice %299 {offsets = [0, 0], sizes = [8, 32], strides = [1, 1]} : vector<8x64xf32> to vector<8x32xf32>
    %301 = vector.extract_strided_slice %299 {offsets = [0, 32], sizes = [8, 32], strides = [1, 1]} : vector<8x64xf32> to vector<8x32xf32>
    %302 = vector.extract_strided_slice %0 {offsets = [0, 64], sizes = [1, 32], strides = [1, 1]} : vector<1x96xf32> to vector<1x32xf32>
    %303 = vector.extract_strided_slice %288 {offsets = [0, 64], sizes = [8, 32], strides = [1, 1]} : vector<8x96xf32> to vector<8x32xf32>
    %304 = vector.broadcast %1 : vector<1x32xf32> to vector<8x32xf32>
    %305 = arith.addf %303, %304 : vector<8x32xf32>
    %306 = arith.mulf %300, %305 : vector<8x32xf32>
    %307 = vector.broadcast %302 : vector<1x32xf32> to vector<8x32xf32>
    %308 = arith.addf %307, %306 : vector<8x32xf32>
    %309 = math.tanh %308 : vector<8x32xf32>
    %310 = arith.subf %286, %309 : vector<8x32xf32>
    %311 = arith.mulf %301, %310 : vector<8x32xf32>
    %312 = arith.addf %309, %311 : vector<8x32xf32>
    %313 = arith.truncf %312 : vector<8x32xf32> to vector<8x32xbf16>
    %cst_58 = arith.constant dense<0.000000e+00> : vector<8x96xf32>
    %314 = tpu.matmul %313, %2, %cst_58 {dimension_numbers = #tpu.dot_dimension_numbers<[1], [0], [0], [1], [0, 0, 1, 1], [], []>} : vector<8x32xbf16>, vector<32x96xbf16>, vector<8x96xf32> -> vector<8x96xf32>
    %315 = vector.extract_strided_slice %0 {offsets = [0, 0], sizes = [1, 64], strides = [1, 1]} : vector<1x96xf32> to vector<1x64xf32>
    %316 = vector.extract_strided_slice %314 {offsets = [0, 0], sizes = [8, 64], strides = [1, 1]} : vector<8x96xf32> to vector<8x64xf32>
    %317 = vector.broadcast %315 : vector<1x64xf32> to vector<8x64xf32>
    %318 = arith.addf %317, %316 : vector<8x64xf32>
    %cst_59 = arith.constant 5.000000e-01 : f32
    %319 = vector.broadcast %cst_59 : f32 to vector<8x64xf32>
    %320 = arith.mulf %319, %318 : vector<8x64xf32>
    %321 = math.tanh %320 : vector<8x64xf32>
    %cst_60 = arith.constant 5.000000e-01 : f32
    %322 = vector.broadcast %cst_60 : f32 to vector<8x64xf32>
    %323 = arith.mulf %322, %321 : vector<8x64xf32>
    %cst_61 = arith.constant 5.000000e-01 : f32
    %324 = vector.broadcast %cst_61 : f32 to vector<8x64xf32>
    %325 = arith.addf %324, %323 : vector<8x64xf32>
    %326 = vector.extract_strided_slice %325 {offsets = [0, 0], sizes = [8, 32], strides = [1, 1]} : vector<8x64xf32> to vector<8x32xf32>
    %327 = vector.extract_strided_slice %325 {offsets = [0, 32], sizes = [8, 32], strides = [1, 1]} : vector<8x64xf32> to vector<8x32xf32>
    %328 = vector.extract_strided_slice %0 {offsets = [0, 64], sizes = [1, 32], strides = [1, 1]} : vector<1x96xf32> to vector<1x32xf32>
    %329 = vector.extract_strided_slice %314 {offsets = [0, 64], sizes = [8, 32], strides = [1, 1]} : vector<8x96xf32> to vector<8x32xf32>
    %330 = vector.broadcast %1 : vector<1x32xf32> to vector<8x32xf32>
    %331 = arith.addf %329, %330 : vector<8x32xf32>
    %332 = arith.mulf %326, %331 : vector<8x32xf32>
    %333 = vector.broadcast %328 : vector<1x32xf32> to vector<8x32xf32>
    %334 = arith.addf %333, %332 : vector<8x32xf32>
    %335 = math.tanh %334 : vector<8x32xf32>
    %336 = arith.subf %312, %335 : vector<8x32xf32>
    %337 = arith.mulf %327, %336 : vector<8x32xf32>
    %338 = arith.addf %335, %337 : vector<8x32xf32>
    %339 = arith.truncf %338 : vector<8x32xf32> to vector<8x32xbf16>
    %cst_62 = arith.constant dense<0.000000e+00> : vector<8x96xf32>
    %340 = tpu.matmul %339, %2, %cst_62 {dimension_numbers = #tpu.dot_dimension_numbers<[1], [0], [0], [1], [0, 0, 1, 1], [], []>} : vector<8x32xbf16>, vector<32x96xbf16>, vector<8x96xf32> -> vector<8x96xf32>
    %341 = vector.extract_strided_slice %0 {offsets = [0, 0], sizes = [1, 64], strides = [1, 1]} : vector<1x96xf32> to vector<1x64xf32>
    %342 = vector.extract_strided_slice %340 {offsets = [0, 0], sizes = [8, 64], strides = [1, 1]} : vector<8x96xf32> to vector<8x64xf32>
    %343 = vector.broadcast %341 : vector<1x64xf32> to vector<8x64xf32>
    %344 = arith.addf %343, %342 : vector<8x64xf32>
    %cst_63 = arith.constant 5.000000e-01 : f32
    %345 = vector.broadcast %cst_63 : f32 to vector<8x64xf32>
    %346 = arith.mulf %345, %344 : vector<8x64xf32>
    %347 = math.tanh %346 : vector<8x64xf32>
    %cst_64 = arith.constant 5.000000e-01 : f32
    %348 = vector.broadcast %cst_64 : f32 to vector<8x64xf32>
    %349 = arith.mulf %348, %347 : vector<8x64xf32>
    %cst_65 = arith.constant 5.000000e-01 : f32
    %350 = vector.broadcast %cst_65 : f32 to vector<8x64xf32>
    %351 = arith.addf %350, %349 : vector<8x64xf32>
    %352 = vector.extract_strided_slice %351 {offsets = [0, 0], sizes = [8, 32], strides = [1, 1]} : vector<8x64xf32> to vector<8x32xf32>
    %353 = vector.extract_strided_slice %351 {offsets = [0, 32], sizes = [8, 32], strides = [1, 1]} : vector<8x64xf32> to vector<8x32xf32>
    %354 = vector.extract_strided_slice %0 {offsets = [0, 64], sizes = [1, 32], strides = [1, 1]} : vector<1x96xf32> to vector<1x32xf32>
    %355 = vector.extract_strided_slice %340 {offsets = [0, 64], sizes = [8, 32], strides = [1, 1]} : vector<8x96xf32> to vector<8x32xf32>
    %356 = vector.broadcast %1 : vector<1x32xf32> to vector<8x32xf32>
    %357 = arith.addf %355, %356 : vector<8x32xf32>
    %358 = arith.mulf %352, %357 : vector<8x32xf32>
    %359 = vector.broadcast %354 : vector<1x32xf32> to vector<8x32xf32>
    %360 = arith.addf %359, %358 : vector<8x32xf32>
    %361 = math.tanh %360 : vector<8x32xf32>
    %362 = arith.subf %338, %361 : vector<8x32xf32>
    %363 = arith.mulf %353, %362 : vector<8x32xf32>
    %364 = arith.addf %361, %363 : vector<8x32xf32>
    %365 = arith.truncf %364 : vector<8x32xf32> to vector<8x32xbf16>
    %cst_66 = arith.constant dense<0.000000e+00> : vector<8x96xf32>
    %366 = tpu.matmul %365, %2, %cst_66 {dimension_numbers = #tpu.dot_dimension_numbers<[1], [0], [0], [1], [0, 0, 1, 1], [], []>} : vector<8x32xbf16>, vector<32x96xbf16>, vector<8x96xf32> -> vector<8x96xf32>
    %367 = vector.extract_strided_slice %0 {offsets = [0, 0], sizes = [1, 64], strides = [1, 1]} : vector<1x96xf32> to vector<1x64xf32>
    %368 = vector.extract_strided_slice %366 {offsets = [0, 0], sizes = [8, 64], strides = [1, 1]} : vector<8x96xf32> to vector<8x64xf32>
    %369 = vector.broadcast %367 : vector<1x64xf32> to vector<8x64xf32>
    %370 = arith.addf %369, %368 : vector<8x64xf32>
    %cst_67 = arith.constant 5.000000e-01 : f32
    %371 = vector.broadcast %cst_67 : f32 to vector<8x64xf32>
    %372 = arith.mulf %371, %370 : vector<8x64xf32>
    %373 = math.tanh %372 : vector<8x64xf32>
    %cst_68 = arith.constant 5.000000e-01 : f32
    %374 = vector.broadcast %cst_68 : f32 to vector<8x64xf32>
    %375 = arith.mulf %374, %373 : vector<8x64xf32>
    %cst_69 = arith.constant 5.000000e-01 : f32
    %376 = vector.broadcast %cst_69 : f32 to vector<8x64xf32>
    %377 = arith.addf %376, %375 : vector<8x64xf32>
    %378 = vector.extract_strided_slice %377 {offsets = [0, 0], sizes = [8, 32], strides = [1, 1]} : vector<8x64xf32> to vector<8x32xf32>
    %379 = vector.extract_strided_slice %377 {offsets = [0, 32], sizes = [8, 32], strides = [1, 1]} : vector<8x64xf32> to vector<8x32xf32>
    %380 = vector.extract_strided_slice %0 {offsets = [0, 64], sizes = [1, 32], strides = [1, 1]} : vector<1x96xf32> to vector<1x32xf32>
    %381 = vector.extract_strided_slice %366 {offsets = [0, 64], sizes = [8, 32], strides = [1, 1]} : vector<8x96xf32> to vector<8x32xf32>
    %382 = vector.broadcast %1 : vector<1x32xf32> to vector<8x32xf32>
    %383 = arith.addf %381, %382 : vector<8x32xf32>
    %384 = arith.mulf %378, %383 : vector<8x32xf32>
    %385 = vector.broadcast %380 : vector<1x32xf32> to vector<8x32xf32>
    %386 = arith.addf %385, %384 : vector<8x32xf32>
    %387 = math.tanh %386 : vector<8x32xf32>
    %388 = arith.subf %364, %387 : vector<8x32xf32>
    %389 = arith.mulf %379, %388 : vector<8x32xf32>
    %390 = arith.addf %387, %389 : vector<8x32xf32>
    %391 = arith.truncf %390 : vector<8x32xf32> to vector<8x32xbf16>
    %cst_70 = arith.constant dense<0.000000e+00> : vector<8x96xf32>
    %392 = tpu.matmul %391, %2, %cst_70 {dimension_numbers = #tpu.dot_dimension_numbers<[1], [0], [0], [1], [0, 0, 1, 1], [], []>} : vector<8x32xbf16>, vector<32x96xbf16>, vector<8x96xf32> -> vector<8x96xf32>
    %393 = vector.extract_strided_slice %0 {offsets = [0, 0], sizes = [1, 64], strides = [1, 1]} : vector<1x96xf32> to vector<1x64xf32>
    %394 = vector.extract_strided_slice %392 {offsets = [0, 0], sizes = [8, 64], strides = [1, 1]} : vector<8x96xf32> to vector<8x64xf32>
    %395 = vector.broadcast %393 : vector<1x64xf32> to vector<8x64xf32>
    %396 = arith.addf %395, %394 : vector<8x64xf32>
    %cst_71 = arith.constant 5.000000e-01 : f32
    %397 = vector.broadcast %cst_71 : f32 to vector<8x64xf32>
    %398 = arith.mulf %397, %396 : vector<8x64xf32>
    %399 = math.tanh %398 : vector<8x64xf32>
    %cst_72 = arith.constant 5.000000e-01 : f32
    %400 = vector.broadcast %cst_72 : f32 to vector<8x64xf32>
    %401 = arith.mulf %400, %399 : vector<8x64xf32>
    %cst_73 = arith.constant 5.000000e-01 : f32
    %402 = vector.broadcast %cst_73 : f32 to vector<8x64xf32>
    %403 = arith.addf %402, %401 : vector<8x64xf32>
    %404 = vector.extract_strided_slice %403 {offsets = [0, 0], sizes = [8, 32], strides = [1, 1]} : vector<8x64xf32> to vector<8x32xf32>
    %405 = vector.extract_strided_slice %403 {offsets = [0, 32], sizes = [8, 32], strides = [1, 1]} : vector<8x64xf32> to vector<8x32xf32>
    %406 = vector.extract_strided_slice %0 {offsets = [0, 64], sizes = [1, 32], strides = [1, 1]} : vector<1x96xf32> to vector<1x32xf32>
    %407 = vector.extract_strided_slice %392 {offsets = [0, 64], sizes = [8, 32], strides = [1, 1]} : vector<8x96xf32> to vector<8x32xf32>
    %408 = vector.broadcast %1 : vector<1x32xf32> to vector<8x32xf32>
    %409 = arith.addf %407, %408 : vector<8x32xf32>
    %410 = arith.mulf %404, %409 : vector<8x32xf32>
    %411 = vector.broadcast %406 : vector<1x32xf32> to vector<8x32xf32>
    %412 = arith.addf %411, %410 : vector<8x32xf32>
    %413 = math.tanh %412 : vector<8x32xf32>
    %414 = arith.subf %390, %413 : vector<8x32xf32>
    %415 = arith.mulf %405, %414 : vector<8x32xf32>
    %416 = arith.addf %413, %415 : vector<8x32xf32>
    %417 = arith.truncf %416 : vector<8x32xf32> to vector<8x32xbf16>
    %cst_74 = arith.constant dense<0.000000e+00> : vector<8x96xf32>
    %418 = tpu.matmul %417, %2, %cst_74 {dimension_numbers = #tpu.dot_dimension_numbers<[1], [0], [0], [1], [0, 0, 1, 1], [], []>} : vector<8x32xbf16>, vector<32x96xbf16>, vector<8x96xf32> -> vector<8x96xf32>
    %419 = vector.extract_strided_slice %0 {offsets = [0, 0], sizes = [1, 64], strides = [1, 1]} : vector<1x96xf32> to vector<1x64xf32>
    %420 = vector.extract_strided_slice %418 {offsets = [0, 0], sizes = [8, 64], strides = [1, 1]} : vector<8x96xf32> to vector<8x64xf32>
    %421 = vector.broadcast %419 : vector<1x64xf32> to vector<8x64xf32>
    %422 = arith.addf %421, %420 : vector<8x64xf32>
    %cst_75 = arith.constant 5.000000e-01 : f32
    %423 = vector.broadcast %cst_75 : f32 to vector<8x64xf32>
    %424 = arith.mulf %423, %422 : vector<8x64xf32>
    %425 = math.tanh %424 : vector<8x64xf32>
    %cst_76 = arith.constant 5.000000e-01 : f32
    %426 = vector.broadcast %cst_76 : f32 to vector<8x64xf32>
    %427 = arith.mulf %426, %425 : vector<8x64xf32>
    %cst_77 = arith.constant 5.000000e-01 : f32
    %428 = vector.broadcast %cst_77 : f32 to vector<8x64xf32>
    %429 = arith.addf %428, %427 : vector<8x64xf32>
    %430 = vector.extract_strided_slice %429 {offsets = [0, 0], sizes = [8, 32], strides = [1, 1]} : vector<8x64xf32> to vector<8x32xf32>
    %431 = vector.extract_strided_slice %429 {offsets = [0, 32], sizes = [8, 32], strides = [1, 1]} : vector<8x64xf32> to vector<8x32xf32>
    %432 = vector.extract_strided_slice %0 {offsets = [0, 64], sizes = [1, 32], strides = [1, 1]} : vector<1x96xf32> to vector<1x32xf32>
    %433 = vector.extract_strided_slice %418 {offsets = [0, 64], sizes = [8, 32], strides = [1, 1]} : vector<8x96xf32> to vector<8x32xf32>
    %434 = vector.broadcast %1 : vector<1x32xf32> to vector<8x32xf32>
    %435 = arith.addf %433, %434 : vector<8x32xf32>
    %436 = arith.mulf %430, %435 : vector<8x32xf32>
    %437 = vector.broadcast %432 : vector<1x32xf32> to vector<8x32xf32>
    %438 = arith.addf %437, %436 : vector<8x32xf32>
    %439 = math.tanh %438 : vector<8x32xf32>
    %440 = arith.subf %416, %439 : vector<8x32xf32>
    %441 = arith.mulf %431, %440 : vector<8x32xf32>
    %442 = arith.addf %439, %441 : vector<8x32xf32>
    %443 = arith.truncf %442 : vector<8x32xf32> to vector<8x32xbf16>
    %cst_78 = arith.constant dense<0.000000e+00> : vector<8x96xf32>
    %444 = tpu.matmul %443, %2, %cst_78 {dimension_numbers = #tpu.dot_dimension_numbers<[1], [0], [0], [1], [0, 0, 1, 1], [], []>} : vector<8x32xbf16>, vector<32x96xbf16>, vector<8x96xf32> -> vector<8x96xf32>
    %445 = vector.extract_strided_slice %0 {offsets = [0, 0], sizes = [1, 64], strides = [1, 1]} : vector<1x96xf32> to vector<1x64xf32>
    %446 = vector.extract_strided_slice %444 {offsets = [0, 0], sizes = [8, 64], strides = [1, 1]} : vector<8x96xf32> to vector<8x64xf32>
    %447 = vector.broadcast %445 : vector<1x64xf32> to vector<8x64xf32>
    %448 = arith.addf %447, %446 : vector<8x64xf32>
    %cst_79 = arith.constant 5.000000e-01 : f32
    %449 = vector.broadcast %cst_79 : f32 to vector<8x64xf32>
    %450 = arith.mulf %449, %448 : vector<8x64xf32>
    %451 = math.tanh %450 : vector<8x64xf32>
    %cst_80 = arith.constant 5.000000e-01 : f32
    %452 = vector.broadcast %cst_80 : f32 to vector<8x64xf32>
    %453 = arith.mulf %452, %451 : vector<8x64xf32>
    %cst_81 = arith.constant 5.000000e-01 : f32
    %454 = vector.broadcast %cst_81 : f32 to vector<8x64xf32>
    %455 = arith.addf %454, %453 : vector<8x64xf32>
    %456 = vector.extract_strided_slice %455 {offsets = [0, 0], sizes = [8, 32], strides = [1, 1]} : vector<8x64xf32> to vector<8x32xf32>
    %457 = vector.extract_strided_slice %455 {offsets = [0, 32], sizes = [8, 32], strides = [1, 1]} : vector<8x64xf32> to vector<8x32xf32>
    %458 = vector.extract_strided_slice %0 {offsets = [0, 64], sizes = [1, 32], strides = [1, 1]} : vector<1x96xf32> to vector<1x32xf32>
    %459 = vector.extract_strided_slice %444 {offsets = [0, 64], sizes = [8, 32], strides = [1, 1]} : vector<8x96xf32> to vector<8x32xf32>
    %460 = vector.broadcast %1 : vector<1x32xf32> to vector<8x32xf32>
    %461 = arith.addf %459, %460 : vector<8x32xf32>
    %462 = arith.mulf %456, %461 : vector<8x32xf32>
    %463 = vector.broadcast %458 : vector<1x32xf32> to vector<8x32xf32>
    %464 = arith.addf %463, %462 : vector<8x32xf32>
    %465 = math.tanh %464 : vector<8x32xf32>
    %466 = arith.subf %442, %465 : vector<8x32xf32>
    %467 = arith.mulf %457, %466 : vector<8x32xf32>
    %468 = arith.addf %465, %467 : vector<8x32xf32>
    %469 = tpu.concatenate %234, %260, %286, %312, %338, %364, %390, %416, %442, %468 in 0 : vector<8x32xf32>, vector<8x32xf32>, vector<8x32xf32>, vector<8x32xf32>, vector<8x32xf32>, vector<8x32xf32>, vector<8x32xf32>, vector<8x32xf32>, vector<8x32xf32>, vector<8x32xf32> -> vector<80x32xf32>
    %c0_82 = arith.constant 0 : index
    %c0_83 = arith.constant 0 : index
    %470 = vector.load %arg5[%c0_82, %c0_83] : memref<32x4xf32, #tpu.memory_space<vmem>>, vector<32x4xf32>
    %cst_84 = arith.constant dense<0.000000e+00> : vector<80x4xf32>
    %471 = tpu.matmul %469, %470, %cst_84 {dimension_numbers = #tpu.dot_dimension_numbers<[1], [0], [0], [1], [0, 0, 1, 1], [], []>} : vector<80x32xf32>, vector<32x4xf32>, vector<80x4xf32> -> vector<80x4xf32>
    %c0_85 = arith.constant 0 : index
    %c0_86 = arith.constant 0 : index
    %472 = vector.load %arg6[%c0_85, %c0_86] : memref<1x4xf32, #tpu.memory_space<vmem>>, vector<1x4xf32>
    %473 = vector.broadcast %472 : vector<1x4xf32> to vector<80x4xf32>
    %474 = arith.addf %471, %473 : vector<80x4xf32>
    %c0_87 = arith.constant 0 : index
    %c0_88 = arith.constant 0 : index
    %475 = vector.load %arg7[%c0_87, %c0_88] : memref<80x4xf32, #tpu.memory_space<vmem>>, vector<80x4xf32>
    tpu.vector_store %arg7[%c0_87, %c0_88], %474 {strides = array<i32>} : memref<80x4xf32, #tpu.memory_space<vmem>>, vector<80x4xf32>,
    return
  }
}

</mosaic_0001>

<bundles_post_ra>
// kernel: gru_predictor_forward.1
= control target key start
LH: loop header
LB: loop body
LE: loop exit
PB: predicated region body
PF: predicated region fallthrough
CT: control target
= control target key end

     0   :  { %vm81_vm0 = vcmask 1041408   ;;  %vm68_vm1 = vcmask 31744   ;;  %v2088_v4 = vmov 0.0   ;;  %vm2089_vm2 = vmmov 0   ;;  %s2092_s17 = smov 96   ;;  %s2093_s18 = smov 32   ;;  %s2582_s1 = inlined_call_operand.vmem [shape: bf16[4,96], index: 1, kind: input, shape index: {}]   ;;  %s2583_s0 = inlined_call_operand.vmem [shape: bf16[64,4], index: 0, kind: input, shape index: {}]   ;;  %s2584_s2 = inlined_call_operand.vmem [shape: bf16[32,96], index: 2, kind: input, shape index: {}]   ;;  %s2585_s4 = inlined_call_operand.vmem [shape: f32[1,32], index: 4, kind: input, shape index: {}]   ;;  %s2586_s3 = inlined_call_operand.vmem [shape: f32[1,96], index: 3, kind: input, shape index: {}]   ;;  %s2587_s5 = inlined_call_operand.vmem [shape: f32[32,4], index: 5, kind: input, shape index: {}]   ;;  %s2588_s6 = inlined_call_operand.vmem [shape: f32[1,4], index: 6, kind: input, shape index: {}]   ;;  %s2589_s7 = inlined_call_operand.vmem [shape: f32[80,4], index: 7, kind: output, shape index: {}]  }
   0x1   :  { %v41_v0 = vld [vmem:[%s2582_s1] sm:$0x3]  ;;  %v2007_v2 = vld [vmem:[%s2583_s0 + $0x10] sm:$0xff]   ;;  %v2008_v3 = vld [vmem:[%s2583_s0 + $0x18] sm:$0xff]   ;;  %v2091_v10 = vmov 0   ;;  %vm162_vm3 = vcmask 261120  }
   0x2   :  { %2000 = vmatprep.subr.msk.bf16.mxu1 %vm81_vm0, %v41_v0  ;;  %v83_v1 = vsel %vm81_vm0, %v41_v0, 0  ;;  %1999 = vmatprep.subr.msk.bf16.mxu0 %vm81_vm0, %v41_v0  ;;  %v2148_v5 = vld [vmem:[%s2584_s2 + $0x8] sm:$0xff]   ;;  %v2010_v6 = vld [vmem:[%s2583_s0] sm:$0xff]  }
   0x3   :  { %1998 = vmatpush3.bf16.msra.mxu1 %v83_v1  ;;  %1821 = vmatpush3.bf16.msra.mxu0 %v83_v1  ;;  %v2011_v7 = vld [vmem:[%s2583_s0 + $0x8] sm:$0xff]   ;;  %v2163_v8 = vld [vmem:[%s2584_s2] sm:$0xff]   ;;  %s2090_s0 = smov 64  }
   0x4   :  { %1826 = vmatprep.mubr.msk.bf16.mxu1 %vm68_vm1, %v2007_v2  ;;  %1830 = vmatprep.subr.bf16.mxu1 %v2088_v4  ;;  %v1718_v9 = vld [vmem:[%s2585_s4] ss:$0 sm:$0xff] }
   0x5   :  { %1846 = vmatprep.subr.bf16.mxu0 %v2088_v4  ;;  %1822 = vmatprep.mubr.msk.bf16.mxu0 %vm68_vm1, %v2010_v6  ;;  %v2204_v23 = vld [vmem:[%s2586_s3] ss:$0 sm:$0xff] }
   0x6   :  { %1827 = vmatmul.mubr.msk.bf16.vlgmr.msra.gmra.mxu1 %vm68_vm1, %v2008_v3  ;;  %1823 = vmatmul.mubr.msk.bf16.vlgmr.msra.gmra.mxu0 %vm68_vm1, %v2011_v7 }
   0x7   :  { %1831 = vmatpush3.bf16.msra.mxu1 %v2148_v5  ;;  %1834 = vmatprep.mubr.msk.bf16.mxu1 %vm2089_vm2, %v2088_v4 }
   0x8   :  { %1832 = vmatprep.subr.bf16.mxu1 %v2088_v4  ;;  %216 = vrot.lane.b32.xlu0 %v1718_v9, %s2090_s0 }
   0x9   :  { %1847 = vmatpush3.bf16.msra.mxu0 %v2148_v5  ;;  %1850 = vmatprep.mubr.msk.bf16.mxu0 %vm2089_vm2, %v2088_v4 }
   0xa   :  { %1848 = vmatprep.subr.bf16.mxu0 %v2088_v4 }
   0xb   :  { %1833 = vmatpush3.bf16.msra.mxu1 %v2163_v8 }
   0xc   :  { %1838 = vmatprep.subr.bf16.mxu1 %v2088_v4 }
   0xd   :  { %1849 = vmatpush3.bf16.msra.mxu0 %v2163_v8 }
   0xe   :  { %1835 = vmatmul.mubr.bf16.vlgmr.msra.gmra.mxu1 %v2091_v10  ;;  %1862 = vmatprep.subr.bf16.mxu0 %v2088_v4 }
   0xf   :  { %1839 = vmatpush3.bf16.msra.mxu1 %v2148_v5  ;;  %1842 = vmatprep.mubr.msk.bf16.mxu1 %vm2089_vm2, %v2088_v4 }
  0x10   :  { %1840 = vmatprep.subr.bf16.mxu1 %v2088_v4 }
  0x13   :  { %1841 = vmatpush3.bf16.msra.mxu1 %v2163_v8 }
  0x14   :  { %1854 = vmatprep.subr.bf16.mxu1 %v2088_v4 }
  0x7a   :  { %v2195_v15 = vpop.permute.xlu0 %216 }
  0xc6   :  { %v2187_v11 = vpop.f32.mrf.mxu1  ;;  %v2199_v21 = vpop.f32.mrf.mxu0 }
  0xc8   :  { %v2189_v12 = vpop.f32.mrf.mxu1  ;;  %v119_v22 = vpop.f32.mrf.mxu0 }
  0xc9   :  { %v120_v24 = vadd.f32 %v2204_v23, %v119_v22 }
  0xca   :  { %v2191_v13 = vpop.f32.mrf.mxu1  ;;  %v2220_v47 = vpop.f32.mrf.mxu0 }
  0xcc   :  { %v2193_v14 = vpop.f32.mrf.mxu1  ;;  %v122_v48 = vpop.f32.mrf.mxu0 }
  0xcd   :  { %v123_v49 = vadd.f32 %v2204_v23, %v122_v48 }
  0xce   :  { %v200_v16 = vpop.f32.mrf.mxu1 }
  0xcf   :  { %v219_v17 = vadd.f32 %v2195_v15, %v200_v16  ;;  %v206_v25 = vadd.f32 %v200_v16, %v120_v24  ;;  %v128_v16 = vadd.f32 %v2199_v21, %v2204_v23 }
  0xd0   :  { %v1836_v18 = vpop.f32.mrf.mxu1 }
  0xd1   :  { %221 = vrot.lane.b32.xlu0 %v219_v17, %s2090_s0  ;;  %v207_v26 = vmul.f32 0.5, %v206_v25 }
  0xd2   :  { %v203_v19 = vpop.f32.mrf.mxu1 }
  0xd3   :  { %2013 = vtanh.f32 %v207_v26 }
  0xd4   :  { %v1837_v20 = vpop.f32.mrf.mxu1 }
  0xe0   :  { %v2014_v27 = vpop.eup %2013 }
  0xe1   :  { %v209_v28 = vmul.f32 0.5, %v2014_v27 }
  0xe3   :  { %v210_v29 = vadd.f32 0.5, %v209_v28 }
 0x143   :  { %v222_v30 = vpop.permute.xlu0 %221 }
 0x144   :  { %v224_v31 = vmul.f32 %v222_v30, %v210_v29 }
 0x146   :  { %226 = vrot.lane.b32.xlu1 %v224_v31, %s2090_s0 }
 0x1b8   :  { %v227_v32 = vpop.permute.xlu1 %226 }
 0x1b9   :  { %v229_v33 = vadd.f32 %v227_v32, %v120_v24 }
 0x1bb   :  { %2015 = vtanh.f32 %v229_v33 }
 0x1c8   :  { %v2016_v34 = vpop.eup %2015 }
 0x1c9   :  { %v231_v35 = vsub.f32 0.0, %v2016_v34 }
 0x1cb   :  { %233 = vrot.lane.b32.xlu1 %v231_v35, %s2092_s17 }
 0x23d   :  { %v234_v36 = vpop.permute.xlu1 %233 }
 0x23e   :  { %v236_v37 = vmul.f32 %v234_v36, %v210_v29 }
 0x240   :  { %238 = vrot.lane.b32.xlu0 %v236_v37, %s2093_s18 }
 0x2b2   :  { %v239_v38 = vpop.permute.xlu0 %238 }
 0x2b3   :  { %v241_v39 = vadd.f32 %v2016_v34, %v239_v38 }
 0x2b5   :  { %v242_v40 = vpack.c.bf16 %v241_v39, %v241_v39 }
 0x2b7   :  { %244 = vrot.lane.b32.xlu1 %v242_v40, %s2090_s0  ;;  %v131_v40 = vadd.f32 %v2220_v47, %v2204_v23 }
 0x329   :  { %v245_v41 = vpop.permute.xlu1 %244 }
 0x32a   :  { %1843 = vmatmul.mubr.msk.bf16.vlgmr.msra.gmra.mxu1 %vm162_vm3, %v245_v41 }
 0x32b   :  { %1855 = vmatpush3.bf16.msra.mxu1 %v2148_v5  ;;  %1858 = vmatprep.mubr.msk.bf16.mxu1 %vm2089_vm2, %v2088_v4 }
 0x32c   :  { %1856 = vmatprep.subr.bf16.mxu1 %v2088_v4 }
 0x32f   :  { %1857 = vmatpush3.bf16.msra.mxu1 %v2163_v8 }
 0x330   :  { %1870 = vmatprep.subr.bf16.mxu1 %v2088_v4 }
 0x3ea   :  { %v283_v42 = vpop.f32.mrf.mxu1 }
 0x3eb   :  { %v294_v43 = vadd.f32 %v283_v42, %v2195_v15  ;;  %v289_v50 = vadd.f32 %v283_v42, %v123_v49 }
 0x3ec   :  { %v1844_v44 = vpop.f32.mrf.mxu1 }
 0x3ed   :  { %296 = vrot.lane.b32.xlu0 %v294_v43, %s2090_s0  ;;  %v290_v51 = vmul.f32 0.5, %v289_v50 }
 0x3ee   :  { %v286_v45 = vpop.f32.mrf.mxu1 }
 0x3ef   :  { %2017 = vtanh.f32 %v290_v51 }
 0x3f0   :  { %v1845_v46 = vpop.f32.mrf.mxu1 }
 0x3fc   :  { %v2018_v52 = vpop.eup %2017 }
 0x3fd   :  { %v292_v53 = vmul.f32 0.5, %v2018_v52 }
 0x3ff   :  { %v293_v54 = vadd.f32 0.5, %v292_v53 }
 0x45f   :  { %v297_v55 = vpop.permute.xlu0 %296 }
 0x460   :  { %v299_v56 = vmul.f32 %v297_v55, %v293_v54 }
 0x462   :  { %301 = vrot.lane.b32.xlu1 %v299_v56, %s2090_s0 }
 0x4d4   :  { %v302_v57 = vpop.permute.xlu1 %301 }
 0x4d5   :  { %v304_v58 = vadd.f32 %v302_v57, %v123_v49 }
 0x4d7   :  { %2019 = vtanh.f32 %v304_v58 }
 0x4e4   :  { %v2020_v59 = vpop.eup %2019 }
 0x4e5   :  { %v306_v60 = vsub.f32 %v241_v39, %v2020_v59 }
 0x4e7   :  { %308 = vrot.lane.b32.xlu0 %v306_v60, %s2092_s17 }
 0x559   :  { %v309_v61 = vpop.permute.xlu0 %308 }
 0x55a   :  { %v311_v62 = vmul.f32 %v309_v61, %v293_v54 }
 0x55c   :  { %313 = vrot.lane.b32.xlu1 %v311_v62, %s2093_s18 }
 0x5ce   :  { %v314_v63 = vpop.permute.xlu1 %313 }
 0x5cf   :  { %v316_v0 = vadd.f32 %v2020_v59, %v314_v63  ;;  %v136_v63 = vadd.f32 %v2204_v23, %v2189_v12 }
 0x5d1   :  { %v317_v1 = vpack.c.bf16 %v316_v0, %v316_v0 }
 0x5d3   :  { %319 = vrot.lane.b32.xlu0 %v317_v1, %s2090_s0 }
 0x645   :  { %v320_v2 = vpop.permute.xlu0 %319 }
 0x646   :  { %1851 = vmatmul.mubr.msk.bf16.vlgmr.msra.gmra.mxu0 %vm162_vm3, %v320_v2 }
 0x647   :  { %1863 = vmatpush3.bf16.msra.mxu0 %v2148_v5  ;;  %1866 = vmatprep.mubr.msk.bf16.mxu0 %vm2089_vm2, %v2088_v4 }
 0x648   :  { %1864 = vmatprep.subr.bf16.mxu0 %v2088_v4 }
 0x64b   :  { %1865 = vmatpush3.bf16.msra.mxu0 %v2163_v8 }
 0x64c   :  { %1878 = vmatprep.subr.bf16.mxu0 %v2088_v4 }
 0x706   :  { %v358_v3 = vpop.f32.mrf.mxu0 }
 0x707   :  { %v369_v6 = vadd.f32 %v358_v3, %v2195_v15  ;;  %v364_v17 = vadd.f32 %v358_v3, %v128_v16 }
 0x708   :  { %v1852_v7 = vpop.f32.mrf.mxu0 }
 0x709   :  { %371 = vrot.lane.b32.xlu1 %v369_v6, %s2090_s0  ;;  %v365_v18 = vmul.f32 0.5, %v364_v17 }
 0x70a   :  { %v361_v9 = vpop.f32.mrf.mxu0 }
 0x70b   :  { %2021 = vtanh.f32 %v365_v18 }
 0x70c   :  { %v1853_v10 = vpop.f32.mrf.mxu0 }
 0x718   :  { %v2022_v19 = vpop.eup %2021 }
 0x719   :  { %v367_v20 = vmul.f32 0.5, %v2022_v19 }
 0x71b   :  { %v368_v22 = vadd.f32 0.5, %v367_v20 }
 0x77b   :  { %v372_v24 = vpop.permute.xlu1 %371 }
 0x77c   :  { %v374_v25 = vmul.f32 %v372_v24, %v368_v22 }
 0x77e   :  { %376 = vrot.lane.b32.xlu0 %v374_v25, %s2090_s0 }
 0x7f0   :  { %v377_v26 = vpop.permute.xlu0 %376 }
 0x7f1   :  { %v379_v27 = vadd.f32 %v377_v26, %v128_v16 }
 0x7f3   :  { %2023 = vtanh.f32 %v379_v27 }
 0x800   :  { %v2024_v28 = vpop.eup %2023 }
 0x801   :  { %v381_v29 = vsub.f32 %v316_v0, %v2024_v28 }
 0x803   :  { %383 = vrot.lane.b32.xlu1 %v381_v29, %s2092_s17 }
 0x875   :  { %v384_v30 = vpop.permute.xlu1 %383 }
 0x876   :  { %v386_v31 = vmul.f32 %v384_v30, %v368_v22 }
 0x878   :  { %388 = vrot.lane.b32.xlu0 %v386_v31, %s2093_s18  ;;  %v139_v31 = vadd.f32 %v2204_v23, %v2193_v14 }
 0x8ea   :  { %v389_v21 = vpop.permute.xlu0 %388 }
 0x8eb   :  { %v391_v32 = vadd.f32 %v2024_v28, %v389_v21 }
 0x8ed   :  { %v392_v33 = vpack.c.bf16 %v391_v32, %v391_v32 }
 0x8ef   :  { %394 = vrot.lane.b32.xlu1 %v392_v33, %s2090_s0 }
 0x961   :  { %v395_v34 = vpop.permute.xlu1 %394 }
 0x962   :  { %1859 = vmatmul.mubr.msk.bf16.vlgmr.msra.gmra.mxu1 %vm162_vm3, %v395_v34 }
 0x963   :  { %1871 = vmatpush3.bf16.msra.mxu1 %v2148_v5  ;;  %1874 = vmatprep.mubr.msk.bf16.mxu1 %vm2089_vm2, %v2088_v4 }
 0x964   :  { %1872 = vmatprep.subr.bf16.mxu1 %v2088_v4 }
 0x967   :  { %1873 = vmatpush3.bf16.msra.mxu1 %v2163_v8 }
 0x968   :  { %1886 = vmatprep.subr.bf16.mxu1 %v2088_v4 }
 0xa22   :  { %v433_v35 = vpop.f32.mrf.mxu1 }
 0xa23   :  { %v444_v36 = vadd.f32 %v433_v35, %v2195_v15  ;;  %v439_v41 = vadd.f32 %v433_v35, %v131_v40 }
 0xa24   :  { %v1860_v37 = vpop.f32.mrf.mxu1 }
 0xa25   :  { %446 = vrot.lane.b32.xlu0 %v444_v36, %s2090_s0  ;;  %v440_v42 = vmul.f32 0.5, %v439_v41 }
 0xa26   :  { %v436_v38 = vpop.f32.mrf.mxu1 }
 0xa27   :  { %2025 = vtanh.f32 %v440_v42 }
 0xa28   :  { %v1861_v39 = vpop.f32.mrf.mxu1 }
 0xa34   :  { %v2026_v43 = vpop.eup %2025 }
 0xa35   :  { %v442_v44 = vmul.f32 0.5, %v2026_v43 }
 0xa37   :  { %v443_v45 = vadd.f32 0.5, %v442_v44 }
 0xa97   :  { %v447_v46 = vpop.permute.xlu0 %446 }
 0xa98   :  { %v449_v48 = vmul.f32 %v447_v46, %v443_v45 }
 0xa9a   :  { %451 = vrot.lane.b32.xlu1 %v449_v48, %s2090_s0 }
 0xb0c   :  { %v452_v49 = vpop.permute.xlu1 %451 }
 0xb0d   :  { %v454_v50 = vadd.f32 %v452_v49, %v131_v40 }
 0xb0f   :  { %2027 = vtanh.f32 %v454_v50 }
 0xb1c   :  { %v2028_v51 = vpop.eup %2027 }
 0xb1d   :  { %v456_v52 = vsub.f32 %v391_v32, %v2028_v51 }
 0xb1f   :  { %458 = vrot.lane.b32.xlu0 %v456_v52, %s2092_s17 }
 0xb91   :  { %v459_v53 = vpop.permute.xlu0 %458 }
 0xb92   :  { %v461_v54 = vmul.f32 %v459_v53, %v443_v45  ;;  %v144_v53 = vadd.f32 %v2187_v11, %v2204_v23 }
 0xb94   :  { %463 = vrot.lane.b32.xlu1 %v461_v54, %s2093_s18 }
 0xc06   :  { %v464_v47 = vpop.permute.xlu1 %463 }
 0xc07   :  { %v466_v55 = vadd.f32 %v2028_v51, %v464_v47 }
 0xc09   :  { %v467_v56 = vpack.c.bf16 %v466_v55, %v466_v55 }
 0xc0b   :  { %469 = vrot.lane.b32.xlu0 %v467_v56, %s2090_s0 }
 0xc7d   :  { %v470_v57 = vpop.permute.xlu0 %469 }
 0xc7e   :  { %1867 = vmatmul.mubr.msk.bf16.vlgmr.msra.gmra.mxu0 %vm162_vm3, %v470_v57 }
 0xc7f   :  { %1879 = vmatpush3.bf16.msra.mxu0 %v2148_v5  ;;  %1882 = vmatprep.mubr.msk.bf16.mxu0 %vm2089_vm2, %v2088_v4 }
 0xc80   :  { %1880 = vmatprep.subr.bf16.mxu0 %v2088_v4 }
 0xc83   :  { %1881 = vmatpush3.bf16.msra.mxu0 %v2163_v8 }
 0xc84   :  { %1894 = vmatprep.subr.bf16.mxu0 %v2088_v4 }
 0xd3e   :  { %v508_v58 = vpop.f32.mrf.mxu0 }
 0xd3f   :  { %v519_v59 = vadd.f32 %v508_v58, %v2195_v15  ;;  %v514_v0 = vadd.f32 %v508_v58, %v136_v63 }
 0xd40   :  { %v1868_v60 = vpop.f32.mrf.mxu0 }
 0xd41   :  { %521 = vrot.lane.b32.xlu1 %v519_v59, %s2090_s0  ;;  %v515_v1 = vmul.f32 0.5, %v514_v0 }
 0xd42   :  { %v511_v61 = vpop.f32.mrf.mxu0 }
 0xd43   :  { %2029 = vtanh.f32 %v515_v1 }
 0xd44   :  { %v1869_v62 = vpop.f32.mrf.mxu0 }
 0xd50   :  { %v2030_v2 = vpop.eup %2029 }
 0xd51   :  { %v517_v3 = vmul.f32 0.5, %v2030_v2 }
 0xd53   :  { %v518_v6 = vadd.f32 0.5, %v517_v3 }
 0xdb3   :  { %v522_v7 = vpop.permute.xlu1 %521 }
 0xdb4   :  { %v524_v9 = vmul.f32 %v522_v7, %v518_v6 }
 0xdb6   :  { %526 = vrot.lane.b32.xlu0 %v524_v9, %s2090_s0 }
 0xe28   :  { %v527_v10 = vpop.permute.xlu0 %526 }
 0xe29   :  { %v529_v16 = vadd.f32 %v527_v10, %v136_v63 }
 0xe2b   :  { %2031 = vtanh.f32 %v529_v16 }
 0xe38   :  { %v2032_v17 = vpop.eup %2031 }
 0xe39   :  { %v531_v18 = vsub.f32 %v466_v55, %v2032_v17 }
 0xe3b   :  { %533 = vrot.lane.b32.xlu1 %v531_v18, %s2092_s17  ;;  %v147_v18 = vadd.f32 %v2191_v13, %v2204_v23 }
 0xead   :  { %v534_v19 = vpop.permute.xlu1 %533 }
 0xeae   :  { %v536_v20 = vmul.f32 %v534_v19, %v518_v6 }
 0xeb0   :  { %538 = vrot.lane.b32.xlu0 %v536_v20, %s2093_s18 }
 0xf22   :  { %v539_v12 = vpop.permute.xlu0 %538 }
 0xf23   :  { %v541_v22 = vadd.f32 %v2032_v17, %v539_v12 }
 0xf25   :  { %v542_v24 = vpack.c.bf16 %v541_v22, %v541_v22 }
 0xf27   :  { %544 = vrot.lane.b32.xlu1 %v542_v24, %s2090_s0 }
 0xf99   :  { %v545_v25 = vpop.permute.xlu1 %544 }
 0xf9a   :  { %1875 = vmatmul.mubr.msk.bf16.vlgmr.msra.gmra.mxu1 %vm162_vm3, %v545_v25 }
 0xf9b   :  { %1887 = vmatpush3.bf16.msra.mxu1 %v2148_v5  ;;  %1890 = vmatprep.mubr.msk.bf16.mxu1 %vm2089_vm2, %v2088_v4 }
 0xf9c   :  { %1888 = vmatprep.subr.bf16.mxu1 %v2088_v4 }
 0xf9f   :  { %1889 = vmatpush3.bf16.msra.mxu1 %v2163_v8 }
 0xfa0   :  { %1902 = vmatprep.subr.bf16.mxu1 %v2088_v4 }
0x105a   :  { %v583_v26 = vpop.f32.mrf.mxu1 }
0x105b   :  { %v594_v27 = vadd.f32 %v583_v26, %v2195_v15  ;;  %v589_v21 = vadd.f32 %v583_v26, %v139_v31 }
0x105c   :  { %v1876_v28 = vpop.f32.mrf.mxu1 }
0x105d   :  { %596 = vrot.lane.b32.xlu0 %v594_v27, %s2090_s0  ;;  %v590_v32 = vmul.f32 0.5, %v589_v21 }
0x105e   :  { %v586_v29 = vpop.f32.mrf.mxu1 }
0x105f   :  { %2033 = vtanh.f32 %v590_v32 }
0x1060   :  { %v1877_v30 = vpop.f32.mrf.mxu1 }
0x106c   :  { %v2034_v33 = vpop.eup %2033 }
0x106d   :  { %v592_v34 = vmul.f32 0.5, %v2034_v33 }
0x106f   :  { %v593_v35 = vadd.f32 0.5, %v592_v34 }
0x10cf   :  { %v597_v36 = vpop.permute.xlu0 %596 }
0x10d0   :  { %v599_v37 = vmul.f32 %v597_v36, %v593_v35 }
0x10d2   :  { %601 = vrot.lane.b32.xlu1 %v599_v37, %s2090_s0 }
0x1144   :  { %v602_v38 = vpop.permute.xlu1 %601 }
0x1145   :  { %v604_v39 = vadd.f32 %v602_v38, %v139_v31 }
0x1147   :  { %2035 = vtanh.f32 %v604_v39 }
0x1154   :  { %v2036_v40 = vpop.eup %2035 }
0x1155   :  { %v606_v41 = vsub.f32 %v541_v22, %v2036_v40 }
0x1157   :  { %608 = vrot.lane.b32.xlu0 %v606_v41, %s2092_s17 }
0x11c9   :  { %v609_v42 = vpop.permute.xlu0 %608 }
0x11ca   :  { %v611_v43 = vmul.f32 %v609_v42, %v593_v35 }
0x11cc   :  { %613 = vrot.lane.b32.xlu1 %v611_v43, %s2093_s18 }
0x123e   :  { %v614_v14 = vpop.permute.xlu1 %613 }
0x123f   :  { %v616_v44 = vadd.f32 %v2036_v40, %v614_v14 }
0x1241   :  { %v617_v45 = vpack.c.bf16 %v616_v44, %v616_v44 }
0x1243   :  { %619 = vrot.lane.b32.xlu0 %v617_v45, %s2090_s0 }
0x12b5   :  { %v620_v46 = vpop.permute.xlu0 %619 }
0x12b6   :  { %1883 = vmatmul.mubr.msk.bf16.vlgmr.msra.gmra.mxu0 %vm162_vm3, %v620_v46 }
0x12b7   :  { %1895 = vmatpush3.bf16.msra.mxu0 %v2148_v5  ;;  %1898 = vmatprep.mubr.msk.bf16.mxu0 %vm2089_vm2, %v2088_v4 }
0x12b8   :  { %1896 = vmatprep.subr.bf16.mxu0 %v2088_v4 }
0x12bb   :  { %1897 = vmatpush3.bf16.msra.mxu0 %v2163_v8 }
0x12bc   :  { %1910 = vmatprep.subr.bf16.mxu0 %v2088_v4 }
0x1376   :  { %v658_v48 = vpop.f32.mrf.mxu0 }
0x1377   :  { %v669_v49 = vadd.f32 %v658_v48, %v2195_v15  ;;  %v664_v54 = vadd.f32 %v658_v48, %v144_v53 }
0x1378   :  { %v1884_v50 = vpop.f32.mrf.mxu0 }
0x1379   :  { %671 = vrot.lane.b32.xlu1 %v669_v49, %s2090_s0  ;;  %v665_v47 = vmul.f32 0.5, %v664_v54 }
0x137a   :  { %v661_v51 = vpop.f32.mrf.mxu0 }
0x137b   :  { %2037 = vtanh.f32 %v665_v47 }
0x137c   :  { %v1885_v52 = vpop.f32.mrf.mxu0 }
0x1388   :  { %v2038_v55 = vpop.eup %2037 }
0x1389   :  { %v667_v56 = vmul.f32 0.5, %v2038_v55 }
0x138b   :  { %v668_v57 = vadd.f32 0.5, %v667_v56 }
0x13eb   :  { %v672_v58 = vpop.permute.xlu1 %671 }
0x13ec   :  { %v674_v59 = vmul.f32 %v672_v58, %v668_v57 }
0x13ee   :  { %676 = vrot.lane.b32.xlu0 %v674_v59, %s2090_s0 }
0x1460   :  { %v677_v60 = vpop.permute.xlu0 %676 }
0x1461   :  { %v679_v61 = vadd.f32 %v677_v60, %v144_v53 }
0x1463   :  { %2039 = vtanh.f32 %v679_v61 }
0x1470   :  { %v2040_v62 = vpop.eup %2039 }
0x1471   :  { %v681_v63 = vsub.f32 %v616_v44, %v2040_v62 }
0x1473   :  { %683 = vrot.lane.b32.xlu1 %v681_v63, %s2092_s17 }
0x14e5   :  { %v684_v0 = vpop.permute.xlu1 %683 }
0x14e6   :  { %v686_v1 = vmul.f32 %v684_v0, %v668_v57 }
0x14e8   :  { %688 = vrot.lane.b32.xlu0 %v686_v1, %s2093_s18 }
0x155a   :  { %v689_v11 = vpop.permute.xlu0 %688 }
0x155b   :  { %v691_v2 = vadd.f32 %v2040_v62, %v689_v11 }
0x155d   :  { %v692_v3 = vpack.c.bf16 %v691_v2, %v691_v2 }
0x155f   :  { %694 = vrot.lane.b32.xlu1 %v692_v3, %s2090_s0 }
0x15d1   :  { %v695_v6 = vpop.permute.xlu1 %694 }
0x15d2   :  { %1891 = vmatmul.mubr.msk.bf16.vlgmr.msra.gmra.mxu1 %vm162_vm3, %v695_v6 }
0x15d3   :  { %1903 = vmatpush3.bf16.msra.mxu1 %v2148_v5  ;;  %1906 = vmatprep.mubr.msk.bf16.mxu1 %vm2089_vm2, %v2088_v4 }
0x15d4   :  { %1904 = vmatprep.subr.bf16.mxu1 %v2088_v4 }
0x15d7   :  { %1905 = vmatpush3.bf16.msra.mxu1 %v2163_v8 }
0x15d8   :  { %1918 = vmatprep.subr.bf16.mxu1 %v2088_v4 }
0x1692   :  { %v733_v7 = vpop.f32.mrf.mxu1 }
0x1693   :  { %v744_v9 = vadd.f32 %v733_v7, %v2195_v15  ;;  %v739_v19 = vadd.f32 %v733_v7, %v147_v18 }
0x1694   :  { %v1892_v10 = vpop.f32.mrf.mxu1 }
0x1695   :  { %746 = vrot.lane.b32.xlu0 %v744_v9, %s2090_s0  ;;  %v740_v20 = vmul.f32 0.5, %v739_v19 }
0x1696   :  { %v736_v16 = vpop.f32.mrf.mxu1 }
0x1697   :  { %2041 = vtanh.f32 %v740_v20 }
0x1698   :  { %v1893_v17 = vpop.f32.mrf.mxu1 }
0x16a4   :  { %v2042_v12 = vpop.eup %2041 }
0x16a5   :  { %v742_v22 = vmul.f32 0.5, %v2042_v12 }
0x16a7   :  { %v743_v24 = vadd.f32 0.5, %v742_v22 }
0x1707   :  { %v747_v25 = vpop.permute.xlu0 %746 }
0x1708   :  { %v749_v26 = vmul.f32 %v747_v25, %v743_v24 }
0x170a   :  { %751 = vrot.lane.b32.xlu1 %v749_v26, %s2090_s0 }
0x177c   :  { %v752_v27 = vpop.permute.xlu1 %751 }
0x177d   :  { %v754_v28 = vadd.f32 %v752_v27, %v147_v18 }
0x177f   :  { %2043 = vtanh.f32 %v754_v28 }
0x178c   :  { %v2044_v29 = vpop.eup %2043 }
0x178d   :  { %v756_v30 = vsub.f32 %v691_v2, %v2044_v29 }
0x178f   :  { %758 = vrot.lane.b32.xlu0 %v756_v30, %s2092_s17 }
0x1801   :  { %v759_v31 = vpop.permute.xlu0 %758 }
0x1802   :  { %v761_v21 = vmul.f32 %v759_v31, %v743_v24 }
0x1804   :  { %763 = vrot.lane.b32.xlu1 %v761_v21, %s2093_s18 }
0x1876   :  { %v764_v13 = vpop.permute.xlu1 %763 }
0x1877   :  { %v766_v32 = vadd.f32 %v2044_v29, %v764_v13 }
0x1879   :  { %v767_v33 = vpack.c.bf16 %v766_v32, %v766_v32 }
0x187b   :  { %769 = vrot.lane.b32.xlu0 %v767_v33, %s2090_s0 }
0x18ed   :  { %v770_v34 = vpop.permute.xlu0 %769 }
0x18ee   :  { %1899 = vmatmul.mubr.msk.bf16.vlgmr.msra.gmra.mxu0 %vm162_vm3, %v770_v34 }
0x18ef   :  { %1911 = vmatpush3.bf16.msra.mxu0 %v2148_v5  ;;  %1914 = vmatprep.mubr.msk.bf16.mxu0 %vm2089_vm2, %v2088_v4 }
0x18f0   :  { %1912 = vmatprep.subr.bf16.mxu0 %v2088_v4 }
0x18f3   :  { %1913 = vmatpush3.bf16.msra.mxu0 %v2163_v8 }
0x18f4   :  { %1926 = vmatprep.subr.bf16.mxu0 %v2088_v4 }
0x19ae   :  { %v808_v35 = vpop.f32.mrf.mxu0 }
0x19af   :  { %v819_v36 = vadd.f32 %v808_v35, %v2195_v15  ;;  %v814_v40 = vadd.f32 %v2204_v23, %v808_v35 }
0x19b0   :  { %v1900_v37 = vpop.f32.mrf.mxu0 }
0x19b1   :  { %821 = vrot.lane.b32.xlu1 %v819_v36, %s2090_s0  ;;  %v815_v41 = vmul.f32 0.5, %v814_v40 }
0x19b2   :  { %v811_v38 = vpop.f32.mrf.mxu0 }
0x19b3   :  { %2045 = vtanh.f32 %v815_v41 }
0x19b4   :  { %v1901_v39 = vpop.f32.mrf.mxu0 }
0x19c0   :  { %v2046_v42 = vpop.eup %2045 }
0x19c1   :  { %v817_v43 = vmul.f32 0.5, %v2046_v42 }
0x19c3   :  { %v818_v14 = vadd.f32 0.5, %v817_v43 }
0x1a23   :  { %v822_v44 = vpop.permute.xlu1 %821 }
0x1a24   :  { %v824_v45 = vmul.f32 %v822_v44, %v818_v14 }
0x1a26   :  { %826 = vrot.lane.b32.xlu0 %v824_v45, %s2090_s0 }
0x1a98   :  { %v827_v46 = vpop.permute.xlu0 %826 }
0x1a99   :  { %v829_v48 = vadd.f32 %v2204_v23, %v827_v46 }
0x1a9b   :  { %2047 = vtanh.f32 %v829_v48 }
0x1aa8   :  { %v2048_v49 = vpop.eup %2047 }
0x1aa9   :  { %v831_v50 = vsub.f32 %v766_v32, %v2048_v49 }
0x1aab   :  { %833 = vrot.lane.b32.xlu1 %v831_v50, %s2092_s17 }
0x1b1d   :  { %v834_v51 = vpop.permute.xlu1 %833 }
0x1b1e   :  { %v836_v52 = vmul.f32 %v834_v51, %v818_v14 }
0x1b20   :  { %838 = vrot.lane.b32.xlu0 %v836_v52, %s2093_s18 }
0x1b92   :  { %v839_v53 = vpop.permute.xlu0 %838 }
0x1b93   :  { %v2331_v54 = vadd.f32 %v2048_v49, %v839_v53 }
0x1b95   :  { %v842_v47 = vpack.c.bf16 %v2331_v54, %v2331_v54 }
0x1b97   :  { %844 = vrot.lane.b32.xlu1 %v842_v47, %s2090_s0 }
0x1c09   :  { %v845_v55 = vpop.permute.xlu1 %844 }
0x1c0a   :  { %1907 = vmatmul.mubr.msk.bf16.vlgmr.msra.gmra.mxu1 %vm162_vm3, %v845_v55 }
0x1c0b   :  { %1919 = vmatpush3.bf16.msra.mxu1 %v2148_v5  ;;  %1922 = vmatprep.mubr.msk.bf16.mxu1 %vm2089_vm2, %v2088_v4 }
0x1c0c   :  { %1920 = vmatprep.subr.bf16.mxu1 %v2088_v4 }
0x1c0f   :  { %1921 = vmatpush3.bf16.msra.mxu1 %v2163_v8 }
0x1c10   :  { %1934 = vmatprep.subr.bf16.mxu1 %v2088_v4 }
0x1cca   :  { %v883_v56 = vpop.f32.mrf.mxu1 }
0x1ccb   :  { %v894_v57 = vadd.f32 %v883_v56, %v2195_v15  ;;  %v889_v61 = vadd.f32 %v2204_v23, %v883_v56 }
0x1ccc   :  { %v1908_v58 = vpop.f32.mrf.mxu1 }
0x1ccd   :  { %896 = vrot.lane.b32.xlu0 %v894_v57, %s2090_s0  ;;  %v890_v62 = vmul.f32 0.5, %v889_v61 }
0x1cce   :  { %v886_v59 = vpop.f32.mrf.mxu1 }
0x1ccf   :  { %2049 = vtanh.f32 %v890_v62 }
0x1cd0   :  { %v1909_v60 = vpop.f32.mrf.mxu1 }
0x1cdc   :  { %v2050_v63 = vpop.eup %2049 }
0x1cdd   :  { %v892_v0 = vmul.f32 0.5, %v2050_v63 }
0x1cdf   :  { %v893_v1 = vadd.f32 0.5, %v892_v0 }
0x1d3f   :  { %v897_v11 = vpop.permute.xlu0 %896 }
0x1d40   :  { %v899_v2 = vmul.f32 %v897_v11, %v893_v1 }
0x1d42   :  { %901 = vrot.lane.b32.xlu1 %v899_v2, %s2090_s0 }
0x1db4   :  { %v902_v3 = vpop.permute.xlu1 %901 }
0x1db5   :  { %v904_v6 = vadd.f32 %v2204_v23, %v902_v3 }
0x1db7   :  { %2051 = vtanh.f32 %v904_v6 }
0x1dc4   :  { %v2052_v7 = vpop.eup %2051 }
0x1dc5   :  { %v906_v9 = vsub.f32 %v2331_v54, %v2052_v7 }
0x1dc7   :  { %908 = vrot.lane.b32.xlu0 %v906_v9, %s2092_s17 }
0x1e39   :  { %v909_v10 = vpop.permute.xlu0 %908 }
0x1e3a   :  { %v911_v16 = vmul.f32 %v909_v10, %v893_v1 }
0x1e3c   :  { %913 = vrot.lane.b32.xlu1 %v911_v16, %s2093_s18 }
0x1eae   :  { %v914_v17 = vpop.permute.xlu1 %913 }
0x1eaf   :  { %v2351_v18 = vadd.f32 %v2052_v7, %v914_v17 }
0x1eb1   :  { %v917_v19 = vpack.c.bf16 %v2351_v18, %v2351_v18 }
0x1eb3   :  { %919 = vrot.lane.b32.xlu0 %v917_v19, %s2090_s0 }
0x1f25   :  { %v920_v20 = vpop.permute.xlu0 %919 }
0x1f26   :  { %1915 = vmatmul.mubr.msk.bf16.vlgmr.msra.gmra.mxu0 %vm162_vm3, %v920_v20 }
0x1f27   :  { %1927 = vmatpush3.bf16.msra.mxu0 %v2148_v5  ;;  %1930 = vmatprep.mubr.msk.bf16.mxu0 %vm2089_vm2, %v2088_v4 }
0x1f28   :  { %1928 = vmatprep.subr.bf16.mxu0 %v2088_v4 }
0x1f2b   :  { %1929 = vmatpush3.bf16.msra.mxu0 %v2163_v8 }
0x1f2c   :  { %1942 = vmatprep.subr.bf16.mxu0 %v2088_v4 }
0x1fe6   :  { %v958_v12 = vpop.f32.mrf.mxu0 }
0x1fe7   :  { %v969_v22 = vadd.f32 %v958_v12, %v2195_v15  ;;  %v964_v27 = vadd.f32 %v2204_v23, %v958_v12 }
0x1fe8   :  { %v1916_v24 = vpop.f32.mrf.mxu0 }
0x1fe9   :  { %971 = vrot.lane.b32.xlu1 %v969_v22, %s2090_s0  ;;  %v965_v28 = vmul.f32 0.5, %v964_v27 }
0x1fea   :  { %v961_v25 = vpop.f32.mrf.mxu0 }
0x1feb   :  { %2053 = vtanh.f32 %v965_v28 }
0x1fec   :  { %v1917_v26 = vpop.f32.mrf.mxu0 }
0x1ff8   :  { %v2054_v29 = vpop.eup %2053 }
0x1ff9   :  { %v967_v30 = vmul.f32 0.5, %v2054_v29 }
0x1ffb   :  { %v968_v31 = vadd.f32 0.5, %v967_v30 }
0x205b   :  { %v972_v21 = vpop.permute.xlu1 %971 }
0x205c   :  { %v974_v13 = vmul.f32 %v972_v21, %v968_v31 }
0x205e   :  { %976 = vrot.lane.b32.xlu0 %v974_v13, %s2090_s0 }
0x20d0   :  { %v977_v32 = vpop.permute.xlu0 %976 }
0x20d1   :  { %v979_v33 = vadd.f32 %v2204_v23, %v977_v32 }
0x20d3   :  { %2055 = vtanh.f32 %v979_v33 }
0x20e0   :  { %v2056_v34 = vpop.eup %2055 }
0x20e1   :  { %v981_v35 = vsub.f32 %v2351_v18, %v2056_v34 }
0x20e3   :  { %983 = vrot.lane.b32.xlu1 %v981_v35, %s2092_s17 }
0x2155   :  { %v984_v36 = vpop.permute.xlu1 %983 }
0x2156   :  { %v986_v37 = vmul.f32 %v984_v36, %v968_v31 }
0x2158   :  { %988 = vrot.lane.b32.xlu0 %v986_v37, %s2093_s18 }
0x21ca   :  { %v989_v38 = vpop.permute.xlu0 %988 }
0x21cb   :  { %v2371_v39 = vadd.f32 %v2056_v34, %v989_v38 }
0x21cd   :  { %v992_v40 = vpack.c.bf16 %v2371_v39, %v2371_v39 }
0x21cf   :  { %994 = vrot.lane.b32.xlu1 %v992_v40, %s2090_s0 }
0x2241   :  { %v995_v41 = vpop.permute.xlu1 %994 }
0x2242   :  { %1923 = vmatmul.mubr.msk.bf16.vlgmr.msra.gmra.mxu1 %vm162_vm3, %v995_v41 }
0x2243   :  { %1935 = vmatpush3.bf16.msra.mxu1 %v2148_v5  ;;  %1938 = vmatprep.mubr.msk.bf16.mxu1 %vm2089_vm2, %v2088_v4 }
0x2244   :  { %1936 = vmatprep.subr.bf16.mxu1 %v2088_v4 }
0x2247   :  { %1937 = vmatpush3.bf16.msra.mxu1 %v2163_v8 }
0x2248   :  { %1950 = vmatprep.subr.bf16.mxu1 %v2088_v4 }
0x2302   :  { %v1033_v42 = vpop.f32.mrf.mxu1 }
0x2303   :  { %v1044_v43 = vadd.f32 %v1033_v42, %v2195_v15  ;;  %v1039_v46 = vadd.f32 %v2204_v23, %v1033_v42 }
0x2304   :  { %v1924_v14 = vpop.f32.mrf.mxu1 }
0x2305   :  { %1046 = vrot.lane.b32.xlu0 %v1044_v43, %s2090_s0  ;;  %v1040_v48 = vmul.f32 0.5, %v1039_v46 }
0x2306   :  { %v1036_v44 = vpop.f32.mrf.mxu1 }
0x2307   :  { %2057 = vtanh.f32 %v1040_v48 }
0x2308   :  { %v1925_v45 = vpop.f32.mrf.mxu1 }
0x2314   :  { %v2058_v49 = vpop.eup %2057 }
0x2315   :  { %v1042_v50 = vmul.f32 0.5, %v2058_v49 }
0x2317   :  { %v1043_v51 = vadd.f32 0.5, %v1042_v50  ;;  %v2085_v50 = vld [vmem:[%s2584_s2 + $0x8] sm:$0xff]  }
0x2377   :  { %v1047_v52 = vpop.permute.xlu0 %1046 }
0x2378   :  { %v1049_v53 = vmul.f32 %v1047_v52, %v1043_v51 }
0x237a   :  { %1051 = vrot.lane.b32.xlu1 %v1049_v53, %s2090_s0 }
0x23ec   :  { %v1052_v47 = vpop.permute.xlu1 %1051 }
0x23ed   :  { %v1054_v55 = vadd.f32 %v2204_v23, %v1052_v47 }
0x23ef   :  { %2059 = vtanh.f32 %v1054_v55 }
0x23fc   :  { %v2060_v56 = vpop.eup %2059 }
0x23fd   :  { %v1056_v57 = vsub.f32 %v2371_v39, %v2060_v56 }
0x23ff   :  { %1058 = vrot.lane.b32.xlu0 %v1056_v57, %s2092_s17 }
0x2471   :  { %v1059_v58 = vpop.permute.xlu0 %1058 }
0x2472   :  { %v1061_v59 = vmul.f32 %v1059_v58, %v1043_v51  ;;  %v2086_v51 = vld [vmem:[%s2584_s2] sm:$0xff]  }
0x2474   :  { %1063 = vrot.lane.b32.xlu1 %v1061_v59, %s2093_s18 }
0x24e6   :  { %v1064_v60 = vpop.permute.xlu1 %1063 }
0x24e7   :  { %v2391_v61 = vadd.f32 %v2060_v56, %v1064_v60 }
0x24e9   :  { %v1067_v62 = vpack.c.bf16 %v2391_v61, %v2391_v61 }
0x24eb   :  { %1069 = vrot.lane.b32.xlu0 %v1067_v62, %s2090_s0 }
0x255d   :  { %v1070_v63 = vpop.permute.xlu0 %1069 }
0x255e   :  { %1931 = vmatmul.mubr.msk.bf16.vlgmr.msra.gmra.mxu0 %vm162_vm3, %v1070_v63 }
0x255f   :  { %1943 = vmatpush3.bf16.msra.mxu0 %v2148_v5  ;;  %1946 = vmatprep.mubr.msk.bf16.mxu0 %vm2089_vm2, %v2088_v4 }
0x2560   :  { %1944 = vmatprep.subr.bf16.mxu0 %v2088_v4 }
0x2563   :  { %1945 = vmatpush3.bf16.msra.mxu0 %v2163_v8 }
0x2564   :  { %1958 = vmatprep.subr.bf16.mxu0 %v2088_v4 }
0x261e   :  { %v1108_v0 = vpop.f32.mrf.mxu0 }
0x261f   :  { %v1119_v1 = vadd.f32 %v1108_v0, %v2195_v15  ;;  %v1114_v6 = vadd.f32 %v2204_v23, %v1108_v0 }
0x2620   :  { %v1932_v11 = vpop.f32.mrf.mxu0 }
0x2621   :  { %1121 = vrot.lane.b32.xlu1 %v1119_v1, %s2090_s0  ;;  %v1115_v7 = vmul.f32 0.5, %v1114_v6  ;;  %v2453_v11 = vld [vmem:[%s2586_s3] ss:$0 sm:$0xff] }
0x2622   :  { %v1111_v2 = vpop.f32.mrf.mxu0 }
0x2623   :  { %2061 = vtanh.f32 %v1115_v7 }
0x2624   :  { %v1933_v3 = vpop.f32.mrf.mxu0 }
0x2630   :  { %v2062_v9 = vpop.eup %2061 }
0x2631   :  { %v1117_v10 = vmul.f32 0.5, %v2062_v9 }
0x2633   :  { %v1118_v16 = vadd.f32 0.5, %v1117_v10 }
0x2693   :  { %v1122_v17 = vpop.permute.xlu1 %1121 }
0x2694   :  { %v1124_v19 = vmul.f32 %v1122_v17, %v1118_v16 }
0x2696   :  { %1126 = vrot.lane.b32.xlu0 %v1124_v19, %s2090_s0 }
0x2708   :  { %v1127_v20 = vpop.permute.xlu0 %1126 }
0x2709   :  { %v1129_v12 = vadd.f32 %v2204_v23, %v1127_v20 }
0x270b   :  { %2063 = vtanh.f32 %v1129_v12 }
0x2718   :  { %v2064_v22 = vpop.eup %2063 }
0x2719   :  { %v1131_v24 = vsub.f32 %v2391_v61, %v2064_v22 }
0x271b   :  { %1133 = vrot.lane.b32.xlu1 %v1131_v24, %s2092_s17 }
0x278d   :  { %v1134_v25 = vpop.permute.xlu1 %1133 }
0x278e   :  { %v1136_v26 = vmul.f32 %v1134_v25, %v1118_v16 }
0x2790   :  { %1138 = vrot.lane.b32.xlu0 %v1136_v26, %s2093_s18 }
0x2802   :  { %v1139_v27 = vpop.permute.xlu0 %1138 }
0x2803   :  { %v2411_v28 = vadd.f32 %v2064_v22, %v1139_v27 }
0x2805   :  { %v1142_v29 = vpack.c.bf16 %v2411_v28, %v2411_v28 }
0x2807   :  { %1144 = vrot.lane.b32.xlu1 %v1142_v29, %s2090_s0 }
0x2879   :  { %v1145_v30 = vpop.permute.xlu1 %1144 }
0x287a   :  { %1939 = vmatmul.mubr.msk.bf16.vlgmr.msra.gmra.mxu1 %vm162_vm3, %v1145_v30 }
0x287b   :  { %1951 = vmatpush3.bf16.msra.mxu1 %v2148_v5  ;;  %1954 = vmatprep.mubr.msk.bf16.mxu1 %vm2089_vm2, %v2088_v4 }
0x287c   :  { %1952 = vmatprep.subr.bf16.mxu1 %v2088_v4 }
0x287f   :  { %1953 = vmatpush3.bf16.msra.mxu1 %v2163_v8 }
0x2880   :  { %1966 = vmatprep.subr.bf16.mxu1 %v2088_v4 }
0x293a   :  { %v1183_v31 = vpop.f32.mrf.mxu1 }
0x293b   :  { %v1194_v21 = vadd.f32 %v1183_v31, %v2195_v15  ;;  %v1189_v34 = vadd.f32 %v2204_v23, %v1183_v31 }
0x293c   :  { %v1940_v13 = vpop.f32.mrf.mxu1 }
0x293d   :  { %1196 = vrot.lane.b32.xlu0 %v1194_v21, %s2090_s0  ;;  %v1190_v5 = vmul.f32 0.5, %v1189_v34 }
0x293e   :  { %v1186_v32 = vpop.f32.mrf.mxu1 }
0x293f   :  { %2065 = vtanh.f32 %v1190_v5 }
0x2940   :  { %v1941_v33 = vpop.f32.mrf.mxu1 }
0x294c   :  { %v2066_v35 = vpop.eup %2065 }
0x294d   :  { %v1192_v36 = vmul.f32 0.5, %v2066_v35 }
0x294f   :  { %v1193_v37 = vadd.f32 0.5, %v1192_v36 }
0x29af   :  { %v1197_v38 = vpop.permute.xlu0 %1196 }
0x29b0   :  { %v1199_v40 = vmul.f32 %v1197_v38, %v1193_v37 }
0x29b2   :  { %1201 = vrot.lane.b32.xlu1 %v1199_v40, %s2090_s0 }
0x2a24   :  { %v1202_v8 = vpop.permute.xlu1 %1201 }
0x2a25   :  { %v1204_v41 = vadd.f32 %v2204_v23, %v1202_v8 }
0x2a27   :  { %2067 = vtanh.f32 %v1204_v41 }
0x2a34   :  { %v2068_v42 = vpop.eup %2067 }
0x2a35   :  { %v1206_v43 = vsub.f32 %v2411_v28, %v2068_v42 }
0x2a37   :  { %1208 = vrot.lane.b32.xlu0 %v1206_v43, %s2092_s17 }
0x2aa9   :  { %v1209_v14 = vpop.permute.xlu0 %1208 }
0x2aaa   :  { %v1211_v44 = vmul.f32 %v1209_v14, %v1193_v37 }
0x2aac   :  { %1213 = vrot.lane.b32.xlu1 %v1211_v44, %s2093_s18 }
0x2b1e   :  { %v1214_v45 = vpop.permute.xlu1 %1213 }
0x2b1f   :  { %v2431_v46 = vadd.f32 %v2068_v42, %v1214_v45 }
0x2b21   :  { %v1217_v48 = vpack.c.bf16 %v2431_v46, %v2431_v46 }
0x2b23   :  { %1219 = vrot.lane.b32.xlu0 %v1217_v48, %s2090_s0 }
0x2b95   :  { %v1220_v49 = vpop.permute.xlu0 %1219 }
0x2b96   :  { %1947 = vmatmul.mubr.msk.bf16.vlgmr.msra.gmra.mxu0 %vm162_vm3, %v1220_v49 }
0x2b97   :  { %1959 = vmatpush3.bf16.msra.mxu0 %v2085_v50  ;;  %1962 = vmatprep.mubr.msk.bf16.mxu0 %vm2089_vm2, %v2088_v4 }
0x2b98   :  { %1960 = vmatprep.subr.bf16.mxu0 %v2088_v4 }
0x2b9b   :  { %1961 = vmatpush3.bf16.msra.mxu0 %v2086_v51 }
0x2c56   :  { %v1258_v52 = vpop.f32.mrf.mxu0 }
0x2c57   :  { %v1269_v53 = vadd.f32 %v1258_v52, %v2195_v15  ;;  %v1264_v57 = vadd.f32 %v2204_v23, %v1258_v52 }
0x2c58   :  { %v1948_v47 = vpop.f32.mrf.mxu0 }
0x2c59   :  { %1271 = vrot.lane.b32.xlu1 %v1269_v53, %s2090_s0  ;;  %v1265_v58 = vmul.f32 0.5, %v1264_v57 }
0x2c5a   :  { %v1261_v55 = vpop.f32.mrf.mxu0 }
0x2c5b   :  { %2069 = vtanh.f32 %v1265_v58 }
0x2c5c   :  { %v1949_v56 = vpop.f32.mrf.mxu0 }
0x2c68   :  { %v2070_v59 = vpop.eup %2069 }
0x2c69   :  { %v1267_v60 = vmul.f32 0.5, %v2070_v59 }
0x2c6b   :  { %v1268_v62 = vadd.f32 0.5, %v1267_v60 }
0x2ccb   :  { %v1272_v63 = vpop.permute.xlu1 %1271 }
0x2ccc   :  { %v1274_v0 = vmul.f32 %v1272_v63, %v1268_v62 }
0x2cce   :  { %1276 = vrot.lane.b32.xlu0 %v1274_v0, %s2090_s0 }
0x2d40   :  { %v1277_v1 = vpop.permute.xlu0 %1276 }
0x2d41   :  { %v1279_v2 = vadd.f32 %v2453_v11, %v1277_v1 }
0x2d43   :  { %2071 = vtanh.f32 %v1279_v2 }
0x2d50   :  { %v2072_v3 = vpop.eup %2071 }
0x2d51   :  { %v1281_v23 = vsub.f32 %v2431_v46, %v2072_v3 }
0x2d53   :  { %1283 = vrot.lane.b32.xlu1 %v1281_v23, %s2092_s17 }
0x2dc5   :  { %v1284_v6 = vpop.permute.xlu1 %1283 }
0x2dc6   :  { %v1286_v7 = vmul.f32 %v1284_v6, %v1268_v62 }
0x2dc8   :  { %1288 = vrot.lane.b32.xlu0 %v1286_v7, %s2093_s18 }
0x2e3a   :  { %v1289_v9 = vpop.permute.xlu0 %1288 }
0x2e3b   :  { %v2459_v10 = vadd.f32 %v2072_v3, %v1289_v9 }
0x2e3d   :  { %v1292_v16 = vpack.c.bf16 %v2459_v10, %v2459_v10 }
0x2e3f   :  { %1294 = vrot.lane.b32.xlu1 %v1292_v16, %s2090_s0 }
0x2eb1   :  { %v1295_v17 = vpop.permute.xlu1 %1294 }
0x2eb2   :  { %1955 = vmatmul.mubr.msk.bf16.vlgmr.msra.gmra.mxu1 %vm162_vm3, %v1295_v17 }
0x2eb3   :  { %1967 = vmatpush3.bf16.msra.mxu1 %v2085_v50  ;;  %1970 = vmatprep.mubr.msk.bf16.mxu1 %vm2089_vm2, %v2088_v4 }
0x2eb4   :  { %1968 = vmatprep.subr.bf16.mxu1 %v2088_v4 }
0x2eb7   :  { %1969 = vmatpush3.bf16.msra.mxu1 %v2086_v51 }
0x2f72   :  { %v1333_v19 = vpop.f32.mrf.mxu1 }
0x2f73   :  { %v1344_v20 = vadd.f32 %v1333_v19, %v2195_v15  ;;  %v1339_v25 = vadd.f32 %v2453_v11, %v1333_v19 }
0x2f74   :  { %v1956_v12 = vpop.f32.mrf.mxu1 }
0x2f75   :  { %1346 = vrot.lane.b32.xlu0 %v1344_v20, %s2090_s0  ;;  %v1340_v26 = vmul.f32 0.5, %v1339_v25  ;;  %v1519_v25 = vld [vmem:[%s2587_s5 + $0x10] sm:$0xff] }
0x2f76   :  { %v1336_v22 = vpop.f32.mrf.mxu1 }
0x2f77   :  { %2073 = vtanh.f32 %v1340_v26 }
0x2f78   :  { %v1957_v24 = vpop.f32.mrf.mxu1 }
0x2f79   :  { %v1520_v24 = vld [vmem:[%s2587_s5 + $0x18] sm:$0xff] }
0x2f7a   :  { %1974 = vmatprep.subr.mxu0 %v1520_v24 }
0x2f84   :  { %v2074_v27 = vpop.eup %2073 }
0x2f85   :  { %v1342_v29 = vmul.f32 0.5, %v2074_v27 }
0x2f87   :  { %v1343_v30 = vadd.f32 0.5, %v1342_v29 }
0x2fe7   :  { %v1347_v31 = vpop.permute.xlu0 %1346 }
0x2fe8   :  { %v1349_v21 = vmul.f32 %v1347_v31, %v1343_v30 }
0x2fea   :  { %1351 = vrot.lane.b32.xlu1 %v1349_v21, %s2090_s0 }
0x305c   :  { %v1352_v4 = vpop.permute.xlu1 %1351 }
0x305d   :  { %v1354_v13 = vadd.f32 %v2453_v11, %v1352_v4 }
0x305f   :  { %2075 = vtanh.f32 %v1354_v13 }
0x306c   :  { %v2076_v32 = vpop.eup %2075 }
0x306d   :  { %v1356_v33 = vsub.f32 %v2459_v10, %v2076_v32 }
0x306f   :  { %1358 = vrot.lane.b32.xlu0 %v1356_v33, %s2092_s17 }
0x30e1   :  { %v1359_v34 = vpop.permute.xlu0 %1358 }
0x30e2   :  { %v1361_v5 = vmul.f32 %v1359_v34, %v1343_v30 }
0x30e4   :  { %1363 = vrot.lane.b32.xlu1 %v1361_v5, %s2093_s18 }
0x3156   :  { %v1364_v35 = vpop.permute.xlu1 %1363 }
0x3157   :  { %v2476_v36 = vadd.f32 %v2076_v32, %v1364_v35  ;;  %v1736_v32 = vld [vmem:[%s2588_s6] ss:$0 sm:$0xff] }
0x3159   :  { %v1367_v37 = vpack.c.bf16 %v2476_v36, %v2476_v36 }
0x315b   :  { %1369 = vrot.lane.b32.xlu0 %v1367_v37, %s2090_s0 }
0x31cd   :  { %v1370_v38 = vpop.permute.xlu0 %1369 }
0x31ce   :  { %1963 = vmatmul.mubr.msk.bf16.vlgmr.msra.gmra.mxu0 %vm162_vm3, %v1370_v38 }
0x31cf   :  { %1975 = vmatpush3.msra.mxu0 %v1520_v24 }
0x31d0   :  { %1976 = vmatprep.subr.mxu0 %v1519_v25 }
0x31d1   :  { %1977 = vmatpush3.msra.mxu0 %v1519_v25 }
0x328e   :  { %v1408_v40 = vpop.f32.mrf.mxu0 }
0x328f   :  { %v1419_v8 = vadd.f32 %v1408_v40, %v2195_v15  ;;  %v1414_v14 = vadd.f32 %v2453_v11, %v1408_v40 }
0x3290   :  { %v1964_v41 = vpop.f32.mrf.mxu0 }
0x3291   :  { %1421 = vrot.lane.b32.xlu1 %v1419_v8, %s2090_s0  ;;  %v1415_v44 = vmul.f32 0.5, %v1414_v14 }
0x3292   :  { %v1411_v42 = vpop.f32.mrf.mxu0 }
0x3293   :  { %2077 = vtanh.f32 %v1415_v44 }
0x3294   :  { %v1965_v43 = vpop.f32.mrf.mxu0 }
0x32a0   :  { %v2078_v45 = vpop.eup %2077 }
0x32a1   :  { %v1417_v48 = vmul.f32 0.5, %v2078_v45 }
0x32a3   :  { %v1418_v49 = vadd.f32 0.5, %v1417_v48 }
0x3303   :  { %v1422_v50 = vpop.permute.xlu1 %1421 }
0x3304   :  { %v1424_v51 = vmul.f32 %v1422_v50, %v1418_v49 }
0x3306   :  { %1426 = vrot.lane.b32.xlu0 %v1424_v51, %s2090_s0 }
0x3378   :  { %v1427_v52 = vpop.permute.xlu0 %1426 }
0x3379   :  { %v1429_v53 = vadd.f32 %v2453_v11, %v1427_v52 }
0x337b   :  { %2079 = vtanh.f32 %v1429_v53 }
0x3388   :  { %v2080_v47 = vpop.eup %2079 }
0x3389   :  { %v1431_v55 = vsub.f32 %v2476_v36, %v2080_v47 }
0x338b   :  { %1433 = vrot.lane.b32.xlu1 %v1431_v55, %s2092_s17 }
0x33fd   :  { %v1434_v56 = vpop.permute.xlu1 %1433 }
0x33fe   :  { %v1436_v57 = vmul.f32 %v1434_v56, %v1418_v49 }
0x3400   :  { %1438 = vrot.lane.b32.xlu0 %v1436_v57, %s2093_s18 }
0x3472   :  { %v1439_v58 = vpop.permute.xlu0 %1438 }
0x3473   :  { %v1441_v59 = vadd.f32 %v2080_v47, %v1439_v58 }
0x3475   :  { %v1442_v60 = vpack.c.bf16 %v1441_v59, %v1441_v59 }
0x3477   :  { %1444 = vrot.lane.b32.xlu1 %v1442_v60, %s2090_s0 }
0x34e9   :  { %v1445_v62 = vpop.permute.xlu1 %1444 }
0x34ea   :  { %1971 = vmatmul.mubr.msk.bf16.vlgmr.msra.gmra.mxu1 %vm162_vm3, %v1445_v62 }
0x35aa   :  { %v1483_v63 = vpop.f32.mrf.mxu1 }
0x35ab   :  { %v1494_v0 = vadd.f32 %v1483_v63, %v2195_v15  ;;  %v1489_v23 = vadd.f32 %v2453_v11, %v1483_v63 }
0x35ac   :  { %v1972_v1 = vpop.f32.mrf.mxu1 }
0x35ad   :  { %1496 = vrot.lane.b32.xlu0 %v1494_v0, %s2090_s0  ;;  %v1490_v6 = vmul.f32 0.5, %v1489_v23 }
0x35ae   :  { %v1486_v2 = vpop.f32.mrf.mxu1 }
0x35af   :  { %2081 = vtanh.f32 %v1490_v6 }
0x35b0   :  { %v1973_v3 = vpop.f32.mrf.mxu1 }
0x35bc   :  { %v2082_v7 = vpop.eup %2081 }
0x35bd   :  { %v1492_v9 = vmul.f32 0.5, %v2082_v7 }
0x35bf   :  { %v1493_v16 = vadd.f32 0.5, %v1492_v9 }
0x361f   :  { %v1497_v17 = vpop.permute.xlu0 %1496 }
0x3620   :  { %v1499_v19 = vmul.f32 %v1497_v17, %v1493_v16 }
0x3622   :  { %1501 = vrot.lane.b32.xlu1 %v1499_v19, %s2090_s0 }
0x3694   :  { %v1502_v20 = vpop.permute.xlu1 %1501 }
0x3695   :  { %v1504_v12 = vadd.f32 %v2453_v11, %v1502_v20 }
0x3697   :  { %2083 = vtanh.f32 %v1504_v12 }
0x36a4   :  { %v2084_v15 = vpop.eup %2083 }
0x36a5   :  { %v1506_v22 = vsub.f32 %v1441_v59, %v2084_v15 }
0x36a7   :  { %1508 = vrot.lane.b32.xlu0 %v1506_v22, %s2092_s17 }
0x36ab   :  { %1538 = vrot.lane.b32.xlu0 %v2331_v54, %s2090_s0  ;;  %v1518_v54 = vld [vmem:[%s2587_s5 + $0x8] sm:$0xff] }
0x36ac   :  { %1978 = vmatprep.subr.mxu0 %v1518_v54 }
0x36ad   :  { %1979 = vmatpush3.msra.mxu0 %v1518_v54 }
0x36af   :  { %1542 = vrot.lane.b32.xlu0 %v2371_v39, %s2090_s0  ;;  %v1517_v39 = vld [vmem:[%s2587_s5] sm:$0xff] }
0x36b0   :  { %1980 = vmatprep.subr.mxu0 %v1517_v39 }
0x36b1   :  { %1981 = vmatpush3.msra.mxu0 %v1517_v39 }
0x36b3   :  { %1546 = vrot.lane.b32.xlu0 %v2411_v28, %s2090_s0 }
0x36b7   :  { %1550 = vrot.lane.b32.xlu0 %v2459_v10, %s2090_s0 }
0x36bb   :  { %1554 = vrot.lane.b32.xlu0 %v1441_v59, %s2090_s0 }
0x3719   :  { %v1509_v11 = vpop.permute.xlu0 %1508 }
0x371a   :  { %v1511_v26 = vmul.f32 %v1509_v11, %v1493_v16 }
0x371c   :  { %1513 = vrot.lane.b32.xlu1 %v1511_v26, %s2093_s18 }
0x371d   :  { %v1539_v28 = vpop.permute.xlu0 %1538 }
0x371e   :  { %1982 = vmatprep.mubr.msk.f32.mxu0 %vm162_vm3, %v1539_v28 }
0x3720   :  { %1540 = vrot.lane.b32.xlu1 %v2351_v18, %s2090_s0 }
0x3721   :  { %v1543_v10 = vpop.permute.xlu0 %1542 }
0x3724   :  { %1544 = vrot.lane.b32.xlu1 %v2391_v61, %s2090_s0 }
0x3725   :  { %v1547_v31 = vpop.permute.xlu0 %1546 }
0x3728   :  { %1548 = vrot.lane.b32.xlu1 %v2431_v46, %s2090_s0 }
0x3729   :  { %v1551_v61 = vpop.permute.xlu0 %1550 }
0x372c   :  { %1552 = vrot.lane.b32.xlu1 %v2476_v36, %s2090_s0 }
0x372d   :  { %v1555_v4 = vpop.permute.xlu0 %1554 }
0x378e   :  { %v1514_v27 = vpop.permute.xlu1 %1513 }
0x378f   :  { %v1516_v29 = vadd.f32 %v2084_v15, %v1514_v27 }
0x3791   :  { %1556 = vrot.lane.b32.xlu1 %v1516_v29, %s2090_s0 }
0x3792   :  { %v1541_v30 = vpop.permute.xlu1 %1540 }
0x3793   :  { %1983 = vmatmul.mubr.msk.f32.vlgmr.msra.gmra.mxu0 %vm162_vm3, %v1541_v30 }
0x3794   :  { %1985 = vmatprep.mubr.msk.f32.mxu0 %vm162_vm3, %v1543_v10 }
0x3796   :  { %v1545_v18 = vpop.permute.xlu1 %1544 }
0x3797   :  { %1986 = vmatmul.mubr.msk.f32.gmra.mxu0 %vm162_vm3, %v1545_v18 }
0x3798   :  { %1988 = vmatprep.mubr.msk.f32.mxu0 %vm162_vm3, %v1547_v31 }
0x379a   :  { %v1549_v46 = vpop.permute.xlu1 %1548 }
0x379b   :  { %1989 = vmatmul.mubr.msk.f32.gmra.mxu0 %vm162_vm3, %v1549_v46 }
0x379c   :  { %1991 = vmatprep.mubr.msk.f32.mxu0 %vm162_vm3, %v1551_v61 }
0x379e   :  { %v1553_v21 = vpop.permute.xlu1 %1552 }
0x379f   :  { %1992 = vmatmul.mubr.msk.f32.gmra.mxu0 %vm162_vm3, %v1553_v21 }
0x37a0   :  { %1994 = vmatprep.mubr.msk.f32.mxu0 %vm162_vm3, %v1555_v4 }
0x3803   :  { %v1557_v13 = vpop.permute.xlu1 %1556 }
0x3804   :  { %1995 = vmatmul.mubr.msk.f32.gmra.mxu0 %vm162_vm3, %v1557_v13 }
0x3853   :  { %v1984_v33 = vpop.f32.mrf.mxu0 }
0x3854   :  { %v1650_v34 = vadd.f32 %v1984_v33, %v1736_v32 }
0x3855   :  { %v1644_v5 = vpop.f32.mrf.mxu0 }
0x3856   :  { %1694 = vst.msk [vmem:[%s2589_s7 + $0x8] sm:$0xff] %vm68_vm1, %v1650_v34  ;;  %v1645_v35 = vadd.f32 %v1736_v32, %v1644_v5 }
0x3857   :  { %v1987_v36 = vpop.f32.mrf.mxu0 }
0x3858   :  { %1693 = vst.msk [vmem:[%s2589_s7] sm:$0xff] %vm68_vm1, %v1645_v35  ;;  %v1660_v37 = vadd.f32 %v1987_v36, %v1736_v32 }
0x3859   :  { %v1654_v38 = vpop.f32.mrf.mxu0 }
0x385a   :  { %1696 = vst.msk [vmem:[%s2589_s7 + $0x18] sm:$0xff] %vm68_vm1, %v1660_v37  ;;  %v1655_v40 = vadd.f32 %v1736_v32, %v1654_v38 }
0x385b   :  { %v1990_v8 = vpop.f32.mrf.mxu0 }
0x385c   :  { %1695 = vst.msk [vmem:[%s2589_s7 + $0x10] sm:$0xff] %vm68_vm1, %v1655_v40  ;;  %v1670_v41 = vadd.f32 %v1990_v8, %v1736_v32 }
0x385d   :  { %v1664_v42 = vpop.f32.mrf.mxu0 }
0x385e   :  { %1698 = vst.msk [vmem:[%s2589_s7 + $0x28] sm:$0xff] %vm68_vm1, %v1670_v41  ;;  %v1665_v43 = vadd.f32 %v1736_v32, %v1664_v42 }
0x385f   :  { %v1993_v14 = vpop.f32.mrf.mxu0 }
0x3860   :  { %1697 = vst.msk [vmem:[%s2589_s7 + $0x20] sm:$0xff] %vm68_vm1, %v1665_v43  ;;  %v1680_v44 = vadd.f32 %v1993_v14, %v1736_v32 }
0x3861   :  { %v1674_v45 = vpop.f32.mrf.mxu0 }
0x3862   :  { %1700 = vst.msk [vmem:[%s2589_s7 + $0x38] sm:$0xff] %vm68_vm1, %v1680_v44  ;;  %v1675_v48 = vadd.f32 %v1736_v32, %v1674_v45 }
0x3864   :  { %1699 = vst.msk [vmem:[%s2589_s7 + $0x30] sm:$0xff] %vm68_vm1, %v1675_v48 }
0x38c4   :  { %v1996_v49 = vpop.f32.mrf.mxu0 }
0x38c5   :  { %v1690_v50 = vadd.f32 %v1996_v49, %v1736_v32 }
0x38c6   :  { %v1684_v51 = vpop.f32.mrf.mxu0 }
0x38c7   :  { %1702 = vst.msk [vmem:[%s2589_s7 + $0x48] sm:$0xff] %vm68_vm1, %v1690_v50  ;;  %v1685_v52 = vadd.f32 %v1736_v32, %v1684_v51 }
0x38c9   :  { %1701 = vst.msk [vmem:[%s2589_s7 + $0x40] sm:$0xff] %vm68_vm1, %v1685_v52 }

</bundles_post_ra>
